<compile_context>
chip_gen: v7x
topology: tpu7x:2x2x1
jax: 0.10.0
libtpu: 0.0.40
codegen_flags: <defaults>
</compile_context>

<pallas_src>
import jax
import jax.numpy as jnp
from jax.experimental import pallas as pl
from jax.experimental.pallas import tpu as pltpu


def dynamics_gru_kernel(actions_ref, emb_ref, w_ih_ref, w_hh_ref,
                        b_ih_ref, b_hh_ref, h0_ref, out_ref):
    TILE_B, T = actions_ref.shape
    L, Hp = emb_ref.shape

    # Weights stay resident in VMEM for the whole tile (and across grid steps).
    emb = emb_ref[...]
    w_ih = w_ih_ref[...]          # (Hp, 3*Hp)  column blocks: [r | z | n]
    w_hh = w_hh_ref[...]          # (Hp, 3*Hp)
    b_ih = b_ih_ref[...]          # (1, 3*Hp)
    b_hh = b_hh_ref[...]          # (1, 3*Hp)

    acts = actions_ref[...]       # (TILE_B, T) int32
    lane_ids = jax.lax.broadcasted_iota(jnp.int32, (TILE_B, L), 1)

    h = h0_ref[...]               # (TILE_B, Hp) f32
    # T is small & static (action rollout length) -> fully unrolled time loop.
    for t in range(T):
        a_t = acts[:, t:t + 1]                                   # (TILE_B, 1)
        onehot = (a_t == lane_ids).astype(jnp.float32)           # (TILE_B, L)
        # Embedding lookup via one-hot matmul over the tiny vocab, then ReLU.
        x_t = jnp.maximum(
            jnp.dot(onehot, emb, preferred_element_type=jnp.float32), 0.0)
        # Gate pre-activations, all three gates in one lane-dense MXU pass each.
        xg = jnp.dot(x_t, w_ih, preferred_element_type=jnp.float32) + b_ih
        hg = jnp.dot(h, w_hh, preferred_element_type=jnp.float32) + b_hh
        r = jax.nn.sigmoid(xg[:, :Hp] + hg[:, :Hp])
        z = jax.nn.sigmoid(xg[:, Hp:2 * Hp] + hg[:, Hp:2 * Hp])
        n = jnp.tanh(xg[:, 2 * Hp:] + r * hg[:, 2 * Hp:])
        h = (1.0 - z) * n + z * h
        out_ref[t, :, :] = h.astype(out_ref.dtype)               # full 128-lane store


def dynamics_forward(actions, hidden_state, emb, w_ih, w_hh, b_ih, b_hh, *, tile_b=512):
    """actions: (B, T) int; hidden_state: (B, H); emb: (L, H);
       w_ih/w_hh: (3H, H) PyTorch layout (rows = [r, z, n] gates); b_*: (3H,)."""
    B, T = actions.shape
    L, H = emb.shape
    Hp = max(128, ((H + 127) // 128) * 128)           # lane-dense hidden width
    TILE_B = min(tile_b, max(B, 1))
    B_pad = ((B + TILE_B - 1) // TILE_B) * TILE_B

    # --- pack/pad parameters (each gate block padded independently so static
    #     slicing at multiples of Hp inside the kernel stays gate-aligned).
    def pad_gate_w(w):            # (3H, H) torch (out,in) -> (Hp, 3Hp) for x @ W
        cols = []
        for g in range(3):
            wg = jnp.zeros((Hp, Hp), jnp.float32).at[:H, :H].set(w[g * H:(g + 1) * H].T)
            cols.append(wg)
        return jnp.concatenate(cols, axis=1)

    def pad_gate_b(b):            # (3H,) -> (1, 3Hp)
        cols = [jnp.zeros((Hp,), jnp.float32).at[:H].set(b[g * H:(g + 1) * H])
                for g in range(3)]
        return jnp.concatenate(cols).reshape(1, 3 * Hp)

    emb_p = jnp.zeros((L, Hp), jnp.float32).at[:, :H].set(emb.astype(jnp.float32))
    w_ih_p, w_hh_p = pad_gate_w(w_ih), pad_gate_w(w_hh)
    b_ih_p, b_hh_p = pad_gate_b(b_ih), pad_gate_b(b_hh)

    actions_p = jnp.zeros((B_pad, T), jnp.int32).at[:B].set(actions.astype(jnp.int32))
    h0_p = jnp.zeros((B_pad, Hp), jnp.float32).at[:B, :H].set(hidden_state.astype(jnp.float32))

    out = pl.pallas_call(
        dynamics_gru_kernel,
        out_shape=jax.ShapeDtypeStruct((T, B_pad, Hp), jnp.float32),
        grid_spec=pltpu.PrefetchScalarGridSpec(
            num_scalar_prefetch=0,
            grid=(B_pad // TILE_B,),
            in_specs=[
                pl.BlockSpec((TILE_B, T), lambda i: (i, 0)),      # actions (per batch tile)
                pl.BlockSpec((L, Hp), lambda i: (0, 0)),          # embedding table (resident)
                pl.BlockSpec((Hp, 3 * Hp), lambda i: (0, 0)),     # W_ih (resident)
                pl.BlockSpec((Hp, 3 * Hp), lambda i: (0, 0)),     # W_hh (resident)
                pl.BlockSpec((1, 3 * Hp), lambda i: (0, 0)),      # b_ih (resident)
                pl.BlockSpec((1, 3 * Hp), lambda i: (0, 0)),      # b_hh (resident)
                pl.BlockSpec((TILE_B, Hp), lambda i: (i, 0)),     # h0 (per batch tile)
            ],
            out_specs=pl.BlockSpec((T, TILE_B, Hp), lambda i: (0, i, 0)),
        ),
        compiler_params=pltpu.CompilerParams(
            dimension_semantics=("parallel",)),                    # v7x: shard batch across 2 TCs
    )(actions_p, emb_p, w_ih_p, w_hh_p, b_ih_p, b_hh_p, h0_p)

    # (T, B_pad, Hp) -> (B, T, H)
    return jnp.swapaxes(out, 0, 1)[:B, :, :H]


def dynamics_ref(actions, h0, emb, w_ih, w_hh, b_ih, b_hh):
    """Pure-JAX reference matching torch.nn.GRU (gate order r, z, n)."""
    H = h0.shape[-1]
    hi = jax.lax.Precision.HIGHEST
    x = jnp.maximum(emb[actions], 0.0)                            # (B, T, H)
    W_ir, W_iz, W_in = w_ih[:H], w_ih[H:2 * H], w_ih[2 * H:]
    W_hr, W_hz, W_hn = w_hh[:H], w_hh[H:2 * H], w_hh[2 * H:]
    b_ir, b_iz, b_in = b_ih[:H], b_ih[H:2 * H], b_ih[2 * H:]
    b_hr, b_hz, b_hn = b_hh[:H], b_hh[H:2 * H], b_hh[2 * H:]

    def step(h, x_t):
        r = jax.nn.sigmoid(jnp.dot(x_t, W_ir.T, precision=hi) + b_ir
                           + jnp.dot(h, W_hr.T, precision=hi) + b_hr)
        z = jax.nn.sigmoid(jnp.dot(x_t, W_iz.T, precision=hi) + b_iz
                           + jnp.dot(h, W_hz.T, precision=hi) + b_hz)
        n = jnp.tanh(jnp.dot(x_t, W_in.T, precision=hi) + b_in
                     + r * (jnp.dot(h, W_hn.T, precision=hi) + b_hn))
        h_new = (1.0 - z) * n + z * h
        return h_new, h_new

    _, ys = jax.lax.scan(step, h0, jnp.swapaxes(x, 0, 1))
    return jnp.swapaxes(ys, 0, 1)                                  # (B, T, H)


if __name__ == "__main__":
    bit_length = 16
    hidden_size = 32
    batch = 2
    seq_len = 8

    key = jax.random.PRNGKey(0)
    k_act, k_h, k_emb, k_wih, k_whh, k_bih, k_bhh = jax.random.split(key, 7)

    actions = jax.random.randint(k_act, (batch, seq_len), 0, bit_length, dtype=jnp.int32)
    hidden_state = jax.random.normal(k_h, (batch, hidden_size), jnp.float32)

    # Parameters in PyTorch layouts: Embedding ~ N(0,1); GRU weights/biases ~ U(+-1/sqrt(H)).
    lim = float(1.0 / (hidden_size ** 0.5))
    emb = jax.random.normal(k_emb, (bit_length, hidden_size), jnp.float32)
    w_ih = jax.random.uniform(k_wih, (3 * hidden_size, hidden_size), jnp.float32, -lim, lim)
    w_hh = jax.random.uniform(k_whh, (3 * hidden_size, hidden_size), jnp.float32, -lim, lim)
    b_ih = jax.random.uniform(k_bih, (3 * hidden_size,), jnp.float32, -lim, lim)
    b_hh = jax.random.uniform(k_bhh, (3 * hidden_size,), jnp.float32, -lim, lim)

    out = dynamics_forward(actions, hidden_state, emb, w_ih, w_hh, b_ih, b_hh)
    out = jax.block_until_ready(out)

    ref = dynamics_ref(actions, hidden_state, emb, w_ih, w_hh, b_ih, b_hh)
    assert out.shape == (batch, seq_len, hidden_size)
    max_err = float(jnp.max(jnp.abs(out - ref)))
    assert jnp.allclose(out, ref, atol=1e-4, rtol=1e-4), max_err

    print("KERNEL_OK")
</pallas_src>

<mosaic_0001>
module attributes {stable_mosaic.version = 11 : i64} {
  func.func @dynamics_gru_kernel(%arg0: i32, %arg1: memref<2x8xi32, #tpu.memory_space<vmem>>, %arg2: memref<16x128xf32, #tpu.memory_space<vmem>>, %arg3: memref<128x384xf32, #tpu.memory_space<vmem>>, %arg4: memref<128x384xf32, #tpu.memory_space<vmem>>, %arg5: memref<1x384xf32, #tpu.memory_space<vmem>>, %arg6: memref<1x384xf32, #tpu.memory_space<vmem>>, %arg7: memref<2x128xf32, #tpu.memory_space<vmem>>, %arg8: memref<8x2x128xf32, #tpu.memory_space<vmem>>) attributes {dimension_semantics = [#tpu.dimension_semantics<parallel>], iteration_bounds = array<i64: 1>, scalar_prefetch = 0 : i64, scratch_operands = 0 : i64, tpu.core_type = #tpu.core_type<tc>, window_params = [{transform_indices = @transform_0, window_bounds = array<i64: 2, 8>}, {pipeline_mode = #tpu.pipeline_mode<synchronous>, transform_indices = @transform_1, window_bounds = array<i64: 16, 128>}, {pipeline_mode = #tpu.pipeline_mode<synchronous>, transform_indices = @transform_2, window_bounds = array<i64: 128, 384>}, {pipeline_mode = #tpu.pipeline_mode<synchronous>, transform_indices = @transform_3, window_bounds = array<i64: 128, 384>}, {pipeline_mode = #tpu.pipeline_mode<synchronous>, transform_indices = @transform_4, window_bounds = array<i64: 1, 384>}, {pipeline_mode = #tpu.pipeline_mode<synchronous>, transform_indices = @transform_5, window_bounds = array<i64: 1, 384>}, {transform_indices = @transform_6, window_bounds = array<i64: 2, 128>}, {transform_indices = @transform_7, window_bounds = array<i64: 8, 2, 128>}]} {
    %c0 = arith.constant 0 : index
    %c0_0 = arith.constant 0 : index
    %0 = vector.load %arg2[%c0, %c0_0] : memref<16x128xf32, #tpu.memory_space<vmem>>, vector<16x128xf32>
    %c0_1 = arith.constant 0 : index
    %c0_2 = arith.constant 0 : index
    %1 = vector.load %arg3[%c0_1, %c0_2] : memref<128x384xf32, #tpu.memory_space<vmem>>, vector<128x384xf32>
    %c0_3 = arith.constant 0 : index
    %c0_4 = arith.constant 0 : index
    %2 = vector.load %arg4[%c0_3, %c0_4] : memref<128x384xf32, #tpu.memory_space<vmem>>, vector<128x384xf32>
    %c0_5 = arith.constant 0 : index
    %c0_6 = arith.constant 0 : index
    %3 = vector.load %arg5[%c0_5, %c0_6] : memref<1x384xf32, #tpu.memory_space<vmem>>, vector<1x384xf32>
    %c0_7 = arith.constant 0 : index
    %c0_8 = arith.constant 0 : index
    %4 = vector.load %arg6[%c0_7, %c0_8] : memref<1x384xf32, #tpu.memory_space<vmem>>, vector<1x384xf32>
    %c0_9 = arith.constant 0 : index
    %c0_10 = arith.constant 0 : index
    %5 = vector.load %arg1[%c0_9, %c0_10] : memref<2x8xi32, #tpu.memory_space<vmem>>, vector<2x8xi32>
    %6 = tpu.iota {dimensions = array<i32: 1>} : vector<2x16xi32>
    %c0_11 = arith.constant 0 : index
    %c0_12 = arith.constant 0 : index
    %7 = vector.load %arg7[%c0_11, %c0_12] : memref<2x128xf32, #tpu.memory_space<vmem>>, vector<2x128xf32>
    %8 = vector.extract_strided_slice %5 {offsets = [0, 0], sizes = [2, 1], strides = [1, 1]} : vector<2x8xi32> to vector<2x1xi32>
    %9 = vector.broadcast %8 : vector<2x1xi32> to vector<2x16xi32>
    %10 = arith.cmpi eq, %9, %6 : vector<2x16xi32>
    %11 = arith.extui %10 : vector<2x16xi1> to vector<2x16xi32>
    %12 = arith.sitofp %11 : vector<2x16xi32> to vector<2x16xf32>
    %cst = arith.constant dense<0.000000e+00> : vector<2x128xf32>
    %13 = tpu.matmul %12, %0, %cst {dimension_numbers = #tpu.dot_dimension_numbers<[1], [0], [0], [1], [0, 0, 1, 1], [], []>} : vector<2x16xf32>, vector<16x128xf32>, vector<2x128xf32> -> vector<2x128xf32>
    %cst_13 = arith.constant 0.000000e+00 : f32
    %14 = vector.broadcast %cst_13 : f32 to vector<2x128xf32>
    %15 = arith.maximumf %13, %14 : vector<2x128xf32>
    %cst_14 = arith.constant dense<0.000000e+00> : vector<2x384xf32>
    %16 = tpu.matmul %15, %1, %cst_14 {dimension_numbers = #tpu.dot_dimension_numbers<[1], [0], [0], [1], [0, 0, 1, 1], [], []>} : vector<2x128xf32>, vector<128x384xf32>, vector<2x384xf32> -> vector<2x384xf32>
    %17 = vector.broadcast %3 : vector<1x384xf32> to vector<2x384xf32>
    %18 = arith.addf %16, %17 : vector<2x384xf32>
    %cst_15 = arith.constant dense<0.000000e+00> : vector<2x384xf32>
    %19 = tpu.matmul %7, %2, %cst_15 {dimension_numbers = #tpu.dot_dimension_numbers<[1], [0], [0], [1], [0, 0, 1, 1], [], []>} : vector<2x128xf32>, vector<128x384xf32>, vector<2x384xf32> -> vector<2x384xf32>
    %20 = vector.broadcast %4 : vector<1x384xf32> to vector<2x384xf32>
    %21 = arith.addf %19, %20 : vector<2x384xf32>
    %22 = vector.extract_strided_slice %18 {offsets = [0, 0], sizes = [2, 128], strides = [1, 1]} : vector<2x384xf32> to vector<2x128xf32>
    %23 = vector.extract_strided_slice %21 {offsets = [0, 0], sizes = [2, 128], strides = [1, 1]} : vector<2x384xf32> to vector<2x128xf32>
    %24 = arith.addf %22, %23 : vector<2x128xf32>
    %25 = arith.negf %24 : vector<2x128xf32>
    %26 = math.exp %25 : vector<2x128xf32>
    %cst_16 = arith.constant 1.000000e+00 : f32
    %27 = vector.broadcast %cst_16 : f32 to vector<2x128xf32>
    %28 = arith.addf %27, %26 : vector<2x128xf32>
    %29 = arith.divf %27, %28 : vector<2x128xf32>
    %30 = vector.extract_strided_slice %18 {offsets = [0, 128], sizes = [2, 128], strides = [1, 1]} : vector<2x384xf32> to vector<2x128xf32>
    %31 = vector.extract_strided_slice %21 {offsets = [0, 128], sizes = [2, 128], strides = [1, 1]} : vector<2x384xf32> to vector<2x128xf32>
    %32 = arith.addf %30, %31 : vector<2x128xf32>
    %33 = arith.negf %32 : vector<2x128xf32>
    %34 = math.exp %33 : vector<2x128xf32>
    %cst_17 = arith.constant 1.000000e+00 : f32
    %35 = vector.broadcast %cst_17 : f32 to vector<2x128xf32>
    %36 = arith.addf %35, %34 : vector<2x128xf32>
    %37 = arith.divf %35, %36 : vector<2x128xf32>
    %38 = vector.extract_strided_slice %18 {offsets = [0, 256], sizes = [2, 128], strides = [1, 1]} : vector<2x384xf32> to vector<2x128xf32>
    %39 = vector.extract_strided_slice %21 {offsets = [0, 256], sizes = [2, 128], strides = [1, 1]} : vector<2x384xf32> to vector<2x128xf32>
    %40 = arith.mulf %29, %39 : vector<2x128xf32>
    %41 = arith.addf %38, %40 : vector<2x128xf32>
    %42 = math.tanh %41 : vector<2x128xf32>
    %cst_18 = arith.constant 1.000000e+00 : f32
    %43 = vector.broadcast %cst_18 : f32 to vector<2x128xf32>
    %44 = arith.subf %43, %37 : vector<2x128xf32>
    %45 = arith.mulf %44, %42 : vector<2x128xf32>
    %46 = arith.mulf %37, %7 : vector<2x128xf32>
    %47 = arith.addf %45, %46 : vector<2x128xf32>
    %c0_19 = arith.constant 0 : index
    %c0_20 = arith.constant 0 : index
    %c0_21 = arith.constant 0 : index
    %48 = vector.load %arg8[%c0_19, %c0_20, %c0_21] : memref<8x2x128xf32, #tpu.memory_space<vmem>>, vector<1x2x128xf32>
    %49 = vector.shape_cast %48 : vector<1x2x128xf32> to vector<2x128xf32>
    %50 = vector.shape_cast %47 : vector<2x128xf32> to vector<1x2x128xf32>
    tpu.vector_store %arg8[%c0_19, %c0_20, %c0_21], %50 {strides = array<i32>} : memref<8x2x128xf32, #tpu.memory_space<vmem>>, vector<1x2x128xf32>,
    %51 = vector.extract_strided_slice %5 {offsets = [0, 1], sizes = [2, 1], strides = [1, 1]} : vector<2x8xi32> to vector<2x1xi32>
    %52 = vector.broadcast %51 : vector<2x1xi32> to vector<2x16xi32>
    %53 = arith.cmpi eq, %52, %6 : vector<2x16xi32>
    %54 = arith.extui %53 : vector<2x16xi1> to vector<2x16xi32>
    %55 = arith.sitofp %54 : vector<2x16xi32> to vector<2x16xf32>
    %cst_22 = arith.constant dense<0.000000e+00> : vector<2x128xf32>
    %56 = tpu.matmul %55, %0, %cst_22 {dimension_numbers = #tpu.dot_dimension_numbers<[1], [0], [0], [1], [0, 0, 1, 1], [], []>} : vector<2x16xf32>, vector<16x128xf32>, vector<2x128xf32> -> vector<2x128xf32>
    %cst_23 = arith.constant 0.000000e+00 : f32
    %57 = vector.broadcast %cst_23 : f32 to vector<2x128xf32>
    %58 = arith.maximumf %56, %57 : vector<2x128xf32>
    %cst_24 = arith.constant dense<0.000000e+00> : vector<2x384xf32>
    %59 = tpu.matmul %58, %1, %cst_24 {dimension_numbers = #tpu.dot_dimension_numbers<[1], [0], [0], [1], [0, 0, 1, 1], [], []>} : vector<2x128xf32>, vector<128x384xf32>, vector<2x384xf32> -> vector<2x384xf32>
    %60 = vector.broadcast %3 : vector<1x384xf32> to vector<2x384xf32>
    %61 = arith.addf %59, %60 : vector<2x384xf32>
    %cst_25 = arith.constant dense<0.000000e+00> : vector<2x384xf32>
    %62 = tpu.matmul %47, %2, %cst_25 {dimension_numbers = #tpu.dot_dimension_numbers<[1], [0], [0], [1], [0, 0, 1, 1], [], []>} : vector<2x128xf32>, vector<128x384xf32>, vector<2x384xf32> -> vector<2x384xf32>
    %63 = vector.broadcast %4 : vector<1x384xf32> to vector<2x384xf32>
    %64 = arith.addf %62, %63 : vector<2x384xf32>
    %65 = vector.extract_strided_slice %61 {offsets = [0, 0], sizes = [2, 128], strides = [1, 1]} : vector<2x384xf32> to vector<2x128xf32>
    %66 = vector.extract_strided_slice %64 {offsets = [0, 0], sizes = [2, 128], strides = [1, 1]} : vector<2x384xf32> to vector<2x128xf32>
    %67 = arith.addf %65, %66 : vector<2x128xf32>
    %68 = arith.negf %67 : vector<2x128xf32>
    %69 = math.exp %68 : vector<2x128xf32>
    %cst_26 = arith.constant 1.000000e+00 : f32
    %70 = vector.broadcast %cst_26 : f32 to vector<2x128xf32>
    %71 = arith.addf %70, %69 : vector<2x128xf32>
    %72 = arith.divf %70, %71 : vector<2x128xf32>
    %73 = vector.extract_strided_slice %61 {offsets = [0, 128], sizes = [2, 128], strides = [1, 1]} : vector<2x384xf32> to vector<2x128xf32>
    %74 = vector.extract_strided_slice %64 {offsets = [0, 128], sizes = [2, 128], strides = [1, 1]} : vector<2x384xf32> to vector<2x128xf32>
    %75 = arith.addf %73, %74 : vector<2x128xf32>
    %76 = arith.negf %75 : vector<2x128xf32>
    %77 = math.exp %76 : vector<2x128xf32>
    %cst_27 = arith.constant 1.000000e+00 : f32
    %78 = vector.broadcast %cst_27 : f32 to vector<2x128xf32>
    %79 = arith.addf %78, %77 : vector<2x128xf32>
    %80 = arith.divf %78, %79 : vector<2x128xf32>
    %81 = vector.extract_strided_slice %61 {offsets = [0, 256], sizes = [2, 128], strides = [1, 1]} : vector<2x384xf32> to vector<2x128xf32>
    %82 = vector.extract_strided_slice %64 {offsets = [0, 256], sizes = [2, 128], strides = [1, 1]} : vector<2x384xf32> to vector<2x128xf32>
    %83 = arith.mulf %72, %82 : vector<2x128xf32>
    %84 = arith.addf %81, %83 : vector<2x128xf32>
    %85 = math.tanh %84 : vector<2x128xf32>
    %cst_28 = arith.constant 1.000000e+00 : f32
    %86 = vector.broadcast %cst_28 : f32 to vector<2x128xf32>
    %87 = arith.subf %86, %80 : vector<2x128xf32>
    %88 = arith.mulf %87, %85 : vector<2x128xf32>
    %89 = arith.mulf %80, %47 : vector<2x128xf32>
    %90 = arith.addf %88, %89 : vector<2x128xf32>
    %c1 = arith.constant 1 : index
    %c0_29 = arith.constant 0 : index
    %c0_30 = arith.constant 0 : index
    %91 = vector.load %arg8[%c1, %c0_29, %c0_30] : memref<8x2x128xf32, #tpu.memory_space<vmem>>, vector<1x2x128xf32>
    %92 = vector.shape_cast %91 : vector<1x2x128xf32> to vector<2x128xf32>
    %93 = vector.shape_cast %90 : vector<2x128xf32> to vector<1x2x128xf32>
    tpu.vector_store %arg8[%c1, %c0_29, %c0_30], %93 {strides = array<i32>} : memref<8x2x128xf32, #tpu.memory_space<vmem>>, vector<1x2x128xf32>,
    %94 = vector.extract_strided_slice %5 {offsets = [0, 2], sizes = [2, 1], strides = [1, 1]} : vector<2x8xi32> to vector<2x1xi32>
    %95 = vector.broadcast %94 : vector<2x1xi32> to vector<2x16xi32>
    %96 = arith.cmpi eq, %95, %6 : vector<2x16xi32>
    %97 = arith.extui %96 : vector<2x16xi1> to vector<2x16xi32>
    %98 = arith.sitofp %97 : vector<2x16xi32> to vector<2x16xf32>
    %cst_31 = arith.constant dense<0.000000e+00> : vector<2x128xf32>
    %99 = tpu.matmul %98, %0, %cst_31 {dimension_numbers = #tpu.dot_dimension_numbers<[1], [0], [0], [1], [0, 0, 1, 1], [], []>} : vector<2x16xf32>, vector<16x128xf32>, vector<2x128xf32> -> vector<2x128xf32>
    %cst_32 = arith.constant 0.000000e+00 : f32
    %100 = vector.broadcast %cst_32 : f32 to vector<2x128xf32>
    %101 = arith.maximumf %99, %100 : vector<2x128xf32>
    %cst_33 = arith.constant dense<0.000000e+00> : vector<2x384xf32>
    %102 = tpu.matmul %101, %1, %cst_33 {dimension_numbers = #tpu.dot_dimension_numbers<[1], [0], [0], [1], [0, 0, 1, 1], [], []>} : vector<2x128xf32>, vector<128x384xf32>, vector<2x384xf32> -> vector<2x384xf32>
    %103 = vector.broadcast %3 : vector<1x384xf32> to vector<2x384xf32>
    %104 = arith.addf %102, %103 : vector<2x384xf32>
    %cst_34 = arith.constant dense<0.000000e+00> : vector<2x384xf32>
    %105 = tpu.matmul %90, %2, %cst_34 {dimension_numbers = #tpu.dot_dimension_numbers<[1], [0], [0], [1], [0, 0, 1, 1], [], []>} : vector<2x128xf32>, vector<128x384xf32>, vector<2x384xf32> -> vector<2x384xf32>
    %106 = vector.broadcast %4 : vector<1x384xf32> to vector<2x384xf32>
    %107 = arith.addf %105, %106 : vector<2x384xf32>
    %108 = vector.extract_strided_slice %104 {offsets = [0, 0], sizes = [2, 128], strides = [1, 1]} : vector<2x384xf32> to vector<2x128xf32>
    %109 = vector.extract_strided_slice %107 {offsets = [0, 0], sizes = [2, 128], strides = [1, 1]} : vector<2x384xf32> to vector<2x128xf32>
    %110 = arith.addf %108, %109 : vector<2x128xf32>
    %111 = arith.negf %110 : vector<2x128xf32>
    %112 = math.exp %111 : vector<2x128xf32>
    %cst_35 = arith.constant 1.000000e+00 : f32
    %113 = vector.broadcast %cst_35 : f32 to vector<2x128xf32>
    %114 = arith.addf %113, %112 : vector<2x128xf32>
    %115 = arith.divf %113, %114 : vector<2x128xf32>
    %116 = vector.extract_strided_slice %104 {offsets = [0, 128], sizes = [2, 128], strides = [1, 1]} : vector<2x384xf32> to vector<2x128xf32>
    %117 = vector.extract_strided_slice %107 {offsets = [0, 128], sizes = [2, 128], strides = [1, 1]} : vector<2x384xf32> to vector<2x128xf32>
    %118 = arith.addf %116, %117 : vector<2x128xf32>
    %119 = arith.negf %118 : vector<2x128xf32>
    %120 = math.exp %119 : vector<2x128xf32>
    %cst_36 = arith.constant 1.000000e+00 : f32
    %121 = vector.broadcast %cst_36 : f32 to vector<2x128xf32>
    %122 = arith.addf %121, %120 : vector<2x128xf32>
    %123 = arith.divf %121, %122 : vector<2x128xf32>
    %124 = vector.extract_strided_slice %104 {offsets = [0, 256], sizes = [2, 128], strides = [1, 1]} : vector<2x384xf32> to vector<2x128xf32>
    %125 = vector.extract_strided_slice %107 {offsets = [0, 256], sizes = [2, 128], strides = [1, 1]} : vector<2x384xf32> to vector<2x128xf32>
    %126 = arith.mulf %115, %125 : vector<2x128xf32>
    %127 = arith.addf %124, %126 : vector<2x128xf32>
    %128 = math.tanh %127 : vector<2x128xf32>
    %cst_37 = arith.constant 1.000000e+00 : f32
    %129 = vector.broadcast %cst_37 : f32 to vector<2x128xf32>
    %130 = arith.subf %129, %123 : vector<2x128xf32>
    %131 = arith.mulf %130, %128 : vector<2x128xf32>
    %132 = arith.mulf %123, %90 : vector<2x128xf32>
    %133 = arith.addf %131, %132 : vector<2x128xf32>
    %c2 = arith.constant 2 : index
    %c0_38 = arith.constant 0 : index
    %c0_39 = arith.constant 0 : index
    %134 = vector.load %arg8[%c2, %c0_38, %c0_39] : memref<8x2x128xf32, #tpu.memory_space<vmem>>, vector<1x2x128xf32>
    %135 = vector.shape_cast %134 : vector<1x2x128xf32> to vector<2x128xf32>
    %136 = vector.shape_cast %133 : vector<2x128xf32> to vector<1x2x128xf32>
    tpu.vector_store %arg8[%c2, %c0_38, %c0_39], %136 {strides = array<i32>} : memref<8x2x128xf32, #tpu.memory_space<vmem>>, vector<1x2x128xf32>,
    %137 = vector.extract_strided_slice %5 {offsets = [0, 3], sizes = [2, 1], strides = [1, 1]} : vector<2x8xi32> to vector<2x1xi32>
    %138 = vector.broadcast %137 : vector<2x1xi32> to vector<2x16xi32>
    %139 = arith.cmpi eq, %138, %6 : vector<2x16xi32>
    %140 = arith.extui %139 : vector<2x16xi1> to vector<2x16xi32>
    %141 = arith.sitofp %140 : vector<2x16xi32> to vector<2x16xf32>
    %cst_40 = arith.constant dense<0.000000e+00> : vector<2x128xf32>
    %142 = tpu.matmul %141, %0, %cst_40 {dimension_numbers = #tpu.dot_dimension_numbers<[1], [0], [0], [1], [0, 0, 1, 1], [], []>} : vector<2x16xf32>, vector<16x128xf32>, vector<2x128xf32> -> vector<2x128xf32>
    %cst_41 = arith.constant 0.000000e+00 : f32
    %143 = vector.broadcast %cst_41 : f32 to vector<2x128xf32>
    %144 = arith.maximumf %142, %143 : vector<2x128xf32>
    %cst_42 = arith.constant dense<0.000000e+00> : vector<2x384xf32>
    %145 = tpu.matmul %144, %1, %cst_42 {dimension_numbers = #tpu.dot_dimension_numbers<[1], [0], [0], [1], [0, 0, 1, 1], [], []>} : vector<2x128xf32>, vector<128x384xf32>, vector<2x384xf32> -> vector<2x384xf32>
    %146 = vector.broadcast %3 : vector<1x384xf32> to vector<2x384xf32>
    %147 = arith.addf %145, %146 : vector<2x384xf32>
    %cst_43 = arith.constant dense<0.000000e+00> : vector<2x384xf32>
    %148 = tpu.matmul %133, %2, %cst_43 {dimension_numbers = #tpu.dot_dimension_numbers<[1], [0], [0], [1], [0, 0, 1, 1], [], []>} : vector<2x128xf32>, vector<128x384xf32>, vector<2x384xf32> -> vector<2x384xf32>
    %149 = vector.broadcast %4 : vector<1x384xf32> to vector<2x384xf32>
    %150 = arith.addf %148, %149 : vector<2x384xf32>
    %151 = vector.extract_strided_slice %147 {offsets = [0, 0], sizes = [2, 128], strides = [1, 1]} : vector<2x384xf32> to vector<2x128xf32>
    %152 = vector.extract_strided_slice %150 {offsets = [0, 0], sizes = [2, 128], strides = [1, 1]} : vector<2x384xf32> to vector<2x128xf32>
    %153 = arith.addf %151, %152 : vector<2x128xf32>
    %154 = arith.negf %153 : vector<2x128xf32>
    %155 = math.exp %154 : vector<2x128xf32>
    %cst_44 = arith.constant 1.000000e+00 : f32
    %156 = vector.broadcast %cst_44 : f32 to vector<2x128xf32>
    %157 = arith.addf %156, %155 : vector<2x128xf32>
    %158 = arith.divf %156, %157 : vector<2x128xf32>
    %159 = vector.extract_strided_slice %147 {offsets = [0, 128], sizes = [2, 128], strides = [1, 1]} : vector<2x384xf32> to vector<2x128xf32>
    %160 = vector.extract_strided_slice %150 {offsets = [0, 128], sizes = [2, 128], strides = [1, 1]} : vector<2x384xf32> to vector<2x128xf32>
    %161 = arith.addf %159, %160 : vector<2x128xf32>
    %162 = arith.negf %161 : vector<2x128xf32>
    %163 = math.exp %162 : vector<2x128xf32>
    %cst_45 = arith.constant 1.000000e+00 : f32
    %164 = vector.broadcast %cst_45 : f32 to vector<2x128xf32>
    %165 = arith.addf %164, %163 : vector<2x128xf32>
    %166 = arith.divf %164, %165 : vector<2x128xf32>
    %167 = vector.extract_strided_slice %147 {offsets = [0, 256], sizes = [2, 128], strides = [1, 1]} : vector<2x384xf32> to vector<2x128xf32>
    %168 = vector.extract_strided_slice %150 {offsets = [0, 256], sizes = [2, 128], strides = [1, 1]} : vector<2x384xf32> to vector<2x128xf32>
    %169 = arith.mulf %158, %168 : vector<2x128xf32>
    %170 = arith.addf %167, %169 : vector<2x128xf32>
    %171 = math.tanh %170 : vector<2x128xf32>
    %cst_46 = arith.constant 1.000000e+00 : f32
    %172 = vector.broadcast %cst_46 : f32 to vector<2x128xf32>
    %173 = arith.subf %172, %166 : vector<2x128xf32>
    %174 = arith.mulf %173, %171 : vector<2x128xf32>
    %175 = arith.mulf %166, %133 : vector<2x128xf32>
    %176 = arith.addf %174, %175 : vector<2x128xf32>
    %c3 = arith.constant 3 : index
    %c0_47 = arith.constant 0 : index
    %c0_48 = arith.constant 0 : index
    %177 = vector.load %arg8[%c3, %c0_47, %c0_48] : memref<8x2x128xf32, #tpu.memory_space<vmem>>, vector<1x2x128xf32>
    %178 = vector.shape_cast %177 : vector<1x2x128xf32> to vector<2x128xf32>
    %179 = vector.shape_cast %176 : vector<2x128xf32> to vector<1x2x128xf32>
    tpu.vector_store %arg8[%c3, %c0_47, %c0_48], %179 {strides = array<i32>} : memref<8x2x128xf32, #tpu.memory_space<vmem>>, vector<1x2x128xf32>,
    %180 = vector.extract_strided_slice %5 {offsets = [0, 4], sizes = [2, 1], strides = [1, 1]} : vector<2x8xi32> to vector<2x1xi32>
    %181 = vector.broadcast %180 : vector<2x1xi32> to vector<2x16xi32>
    %182 = arith.cmpi eq, %181, %6 : vector<2x16xi32>
    %183 = arith.extui %182 : vector<2x16xi1> to vector<2x16xi32>
    %184 = arith.sitofp %183 : vector<2x16xi32> to vector<2x16xf32>
    %cst_49 = arith.constant dense<0.000000e+00> : vector<2x128xf32>
    %185 = tpu.matmul %184, %0, %cst_49 {dimension_numbers = #tpu.dot_dimension_numbers<[1], [0], [0], [1], [0, 0, 1, 1], [], []>} : vector<2x16xf32>, vector<16x128xf32>, vector<2x128xf32> -> vector<2x128xf32>
    %cst_50 = arith.constant 0.000000e+00 : f32
    %186 = vector.broadcast %cst_50 : f32 to vector<2x128xf32>
    %187 = arith.maximumf %185, %186 : vector<2x128xf32>
    %cst_51 = arith.constant dense<0.000000e+00> : vector<2x384xf32>
    %188 = tpu.matmul %187, %1, %cst_51 {dimension_numbers = #tpu.dot_dimension_numbers<[1], [0], [0], [1], [0, 0, 1, 1], [], []>} : vector<2x128xf32>, vector<128x384xf32>, vector<2x384xf32> -> vector<2x384xf32>
    %189 = vector.broadcast %3 : vector<1x384xf32> to vector<2x384xf32>
    %190 = arith.addf %188, %189 : vector<2x384xf32>
    %cst_52 = arith.constant dense<0.000000e+00> : vector<2x384xf32>
    %191 = tpu.matmul %176, %2, %cst_52 {dimension_numbers = #tpu.dot_dimension_numbers<[1], [0], [0], [1], [0, 0, 1, 1], [], []>} : vector<2x128xf32>, vector<128x384xf32>, vector<2x384xf32> -> vector<2x384xf32>
    %192 = vector.broadcast %4 : vector<1x384xf32> to vector<2x384xf32>
    %193 = arith.addf %191, %192 : vector<2x384xf32>
    %194 = vector.extract_strided_slice %190 {offsets = [0, 0], sizes = [2, 128], strides = [1, 1]} : vector<2x384xf32> to vector<2x128xf32>
    %195 = vector.extract_strided_slice %193 {offsets = [0, 0], sizes = [2, 128], strides = [1, 1]} : vector<2x384xf32> to vector<2x128xf32>
    %196 = arith.addf %194, %195 : vector<2x128xf32>
    %197 = arith.negf %196 : vector<2x128xf32>
    %198 = math.exp %197 : vector<2x128xf32>
    %cst_53 = arith.constant 1.000000e+00 : f32
    %199 = vector.broadcast %cst_53 : f32 to vector<2x128xf32>
    %200 = arith.addf %199, %198 : vector<2x128xf32>
    %201 = arith.divf %199, %200 : vector<2x128xf32>
    %202 = vector.extract_strided_slice %190 {offsets = [0, 128], sizes = [2, 128], strides = [1, 1]} : vector<2x384xf32> to vector<2x128xf32>
    %203 = vector.extract_strided_slice %193 {offsets = [0, 128], sizes = [2, 128], strides = [1, 1]} : vector<2x384xf32> to vector<2x128xf32>
    %204 = arith.addf %202, %203 : vector<2x128xf32>
    %205 = arith.negf %204 : vector<2x128xf32>
    %206 = math.exp %205 : vector<2x128xf32>
    %cst_54 = arith.constant 1.000000e+00 : f32
    %207 = vector.broadcast %cst_54 : f32 to vector<2x128xf32>
    %208 = arith.addf %207, %206 : vector<2x128xf32>
    %209 = arith.divf %207, %208 : vector<2x128xf32>
    %210 = vector.extract_strided_slice %190 {offsets = [0, 256], sizes = [2, 128], strides = [1, 1]} : vector<2x384xf32> to vector<2x128xf32>
    %211 = vector.extract_strided_slice %193 {offsets = [0, 256], sizes = [2, 128], strides = [1, 1]} : vector<2x384xf32> to vector<2x128xf32>
    %212 = arith.mulf %201, %211 : vector<2x128xf32>
    %213 = arith.addf %210, %212 : vector<2x128xf32>
    %214 = math.tanh %213 : vector<2x128xf32>
    %cst_55 = arith.constant 1.000000e+00 : f32
    %215 = vector.broadcast %cst_55 : f32 to vector<2x128xf32>
    %216 = arith.subf %215, %209 : vector<2x128xf32>
    %217 = arith.mulf %216, %214 : vector<2x128xf32>
    %218 = arith.mulf %209, %176 : vector<2x128xf32>
    %219 = arith.addf %217, %218 : vector<2x128xf32>
    %c4 = arith.constant 4 : index
    %c0_56 = arith.constant 0 : index
    %c0_57 = arith.constant 0 : index
    %220 = vector.load %arg8[%c4, %c0_56, %c0_57] : memref<8x2x128xf32, #tpu.memory_space<vmem>>, vector<1x2x128xf32>
    %221 = vector.shape_cast %220 : vector<1x2x128xf32> to vector<2x128xf32>
    %222 = vector.shape_cast %219 : vector<2x128xf32> to vector<1x2x128xf32>
    tpu.vector_store %arg8[%c4, %c0_56, %c0_57], %222 {strides = array<i32>} : memref<8x2x128xf32, #tpu.memory_space<vmem>>, vector<1x2x128xf32>,
    %223 = vector.extract_strided_slice %5 {offsets = [0, 5], sizes = [2, 1], strides = [1, 1]} : vector<2x8xi32> to vector<2x1xi32>
    %224 = vector.broadcast %223 : vector<2x1xi32> to vector<2x16xi32>
    %225 = arith.cmpi eq, %224, %6 : vector<2x16xi32>
    %226 = arith.extui %225 : vector<2x16xi1> to vector<2x16xi32>
    %227 = arith.sitofp %226 : vector<2x16xi32> to vector<2x16xf32>
    %cst_58 = arith.constant dense<0.000000e+00> : vector<2x128xf32>
    %228 = tpu.matmul %227, %0, %cst_58 {dimension_numbers = #tpu.dot_dimension_numbers<[1], [0], [0], [1], [0, 0, 1, 1], [], []>} : vector<2x16xf32>, vector<16x128xf32>, vector<2x128xf32> -> vector<2x128xf32>
    %cst_59 = arith.constant 0.000000e+00 : f32
    %229 = vector.broadcast %cst_59 : f32 to vector<2x128xf32>
    %230 = arith.maximumf %228, %229 : vector<2x128xf32>
    %cst_60 = arith.constant dense<0.000000e+00> : vector<2x384xf32>
    %231 = tpu.matmul %230, %1, %cst_60 {dimension_numbers = #tpu.dot_dimension_numbers<[1], [0], [0], [1], [0, 0, 1, 1], [], []>} : vector<2x128xf32>, vector<128x384xf32>, vector<2x384xf32> -> vector<2x384xf32>
    %232 = vector.broadcast %3 : vector<1x384xf32> to vector<2x384xf32>
    %233 = arith.addf %231, %232 : vector<2x384xf32>
    %cst_61 = arith.constant dense<0.000000e+00> : vector<2x384xf32>
    %234 = tpu.matmul %219, %2, %cst_61 {dimension_numbers = #tpu.dot_dimension_numbers<[1], [0], [0], [1], [0, 0, 1, 1], [], []>} : vector<2x128xf32>, vector<128x384xf32>, vector<2x384xf32> -> vector<2x384xf32>
    %235 = vector.broadcast %4 : vector<1x384xf32> to vector<2x384xf32>
    %236 = arith.addf %234, %235 : vector<2x384xf32>
    %237 = vector.extract_strided_slice %233 {offsets = [0, 0], sizes = [2, 128], strides = [1, 1]} : vector<2x384xf32> to vector<2x128xf32>
    %238 = vector.extract_strided_slice %236 {offsets = [0, 0], sizes = [2, 128], strides = [1, 1]} : vector<2x384xf32> to vector<2x128xf32>
    %239 = arith.addf %237, %238 : vector<2x128xf32>
    %240 = arith.negf %239 : vector<2x128xf32>
    %241 = math.exp %240 : vector<2x128xf32>
    %cst_62 = arith.constant 1.000000e+00 : f32
    %242 = vector.broadcast %cst_62 : f32 to vector<2x128xf32>
    %243 = arith.addf %242, %241 : vector<2x128xf32>
    %244 = arith.divf %242, %243 : vector<2x128xf32>
    %245 = vector.extract_strided_slice %233 {offsets = [0, 128], sizes = [2, 128], strides = [1, 1]} : vector<2x384xf32> to vector<2x128xf32>
    %246 = vector.extract_strided_slice %236 {offsets = [0, 128], sizes = [2, 128], strides = [1, 1]} : vector<2x384xf32> to vector<2x128xf32>
    %247 = arith.addf %245, %246 : vector<2x128xf32>
    %248 = arith.negf %247 : vector<2x128xf32>
    %249 = math.exp %248 : vector<2x128xf32>
    %cst_63 = arith.constant 1.000000e+00 : f32
    %250 = vector.broadcast %cst_63 : f32 to vector<2x128xf32>
    %251 = arith.addf %250, %249 : vector<2x128xf32>
    %252 = arith.divf %250, %251 : vector<2x128xf32>
    %253 = vector.extract_strided_slice %233 {offsets = [0, 256], sizes = [2, 128], strides = [1, 1]} : vector<2x384xf32> to vector<2x128xf32>
    %254 = vector.extract_strided_slice %236 {offsets = [0, 256], sizes = [2, 128], strides = [1, 1]} : vector<2x384xf32> to vector<2x128xf32>
    %255 = arith.mulf %244, %254 : vector<2x128xf32>
    %256 = arith.addf %253, %255 : vector<2x128xf32>
    %257 = math.tanh %256 : vector<2x128xf32>
    %cst_64 = arith.constant 1.000000e+00 : f32
    %258 = vector.broadcast %cst_64 : f32 to vector<2x128xf32>
    %259 = arith.subf %258, %252 : vector<2x128xf32>
    %260 = arith.mulf %259, %257 : vector<2x128xf32>
    %261 = arith.mulf %252, %219 : vector<2x128xf32>
    %262 = arith.addf %260, %261 : vector<2x128xf32>
    %c5 = arith.constant 5 : index
    %c0_65 = arith.constant 0 : index
    %c0_66 = arith.constant 0 : index
    %263 = vector.load %arg8[%c5, %c0_65, %c0_66] : memref<8x2x128xf32, #tpu.memory_space<vmem>>, vector<1x2x128xf32>
    %264 = vector.shape_cast %263 : vector<1x2x128xf32> to vector<2x128xf32>
    %265 = vector.shape_cast %262 : vector<2x128xf32> to vector<1x2x128xf32>
    tpu.vector_store %arg8[%c5, %c0_65, %c0_66], %265 {strides = array<i32>} : memref<8x2x128xf32, #tpu.memory_space<vmem>>, vector<1x2x128xf32>,
    %266 = vector.extract_strided_slice %5 {offsets = [0, 6], sizes = [2, 1], strides = [1, 1]} : vector<2x8xi32> to vector<2x1xi32>
    %267 = vector.broadcast %266 : vector<2x1xi32> to vector<2x16xi32>
    %268 = arith.cmpi eq, %267, %6 : vector<2x16xi32>
    %269 = arith.extui %268 : vector<2x16xi1> to vector<2x16xi32>
    %270 = arith.sitofp %269 : vector<2x16xi32> to vector<2x16xf32>
    %cst_67 = arith.constant dense<0.000000e+00> : vector<2x128xf32>
    %271 = tpu.matmul %270, %0, %cst_67 {dimension_numbers = #tpu.dot_dimension_numbers<[1], [0], [0], [1], [0, 0, 1, 1], [], []>} : vector<2x16xf32>, vector<16x128xf32>, vector<2x128xf32> -> vector<2x128xf32>
    %cst_68 = arith.constant 0.000000e+00 : f32
    %272 = vector.broadcast %cst_68 : f32 to vector<2x128xf32>
    %273 = arith.maximumf %271, %272 : vector<2x128xf32>
    %cst_69 = arith.constant dense<0.000000e+00> : vector<2x384xf32>
    %274 = tpu.matmul %273, %1, %cst_69 {dimension_numbers = #tpu.dot_dimension_numbers<[1], [0], [0], [1], [0, 0, 1, 1], [], []>} : vector<2x128xf32>, vector<128x384xf32>, vector<2x384xf32> -> vector<2x384xf32>
    %275 = vector.broadcast %3 : vector<1x384xf32> to vector<2x384xf32>
    %276 = arith.addf %274, %275 : vector<2x384xf32>
    %cst_70 = arith.constant dense<0.000000e+00> : vector<2x384xf32>
    %277 = tpu.matmul %262, %2, %cst_70 {dimension_numbers = #tpu.dot_dimension_numbers<[1], [0], [0], [1], [0, 0, 1, 1], [], []>} : vector<2x128xf32>, vector<128x384xf32>, vector<2x384xf32> -> vector<2x384xf32>
    %278 = vector.broadcast %4 : vector<1x384xf32> to vector<2x384xf32>
    %279 = arith.addf %277, %278 : vector<2x384xf32>
    %280 = vector.extract_strided_slice %276 {offsets = [0, 0], sizes = [2, 128], strides = [1, 1]} : vector<2x384xf32> to vector<2x128xf32>
    %281 = vector.extract_strided_slice %279 {offsets = [0, 0], sizes = [2, 128], strides = [1, 1]} : vector<2x384xf32> to vector<2x128xf32>
    %282 = arith.addf %280, %281 : vector<2x128xf32>
    %283 = arith.negf %282 : vector<2x128xf32>
    %284 = math.exp %283 : vector<2x128xf32>
    %cst_71 = arith.constant 1.000000e+00 : f32
    %285 = vector.broadcast %cst_71 : f32 to vector<2x128xf32>
    %286 = arith.addf %285, %284 : vector<2x128xf32>
    %287 = arith.divf %285, %286 : vector<2x128xf32>
    %288 = vector.extract_strided_slice %276 {offsets = [0, 128], sizes = [2, 128], strides = [1, 1]} : vector<2x384xf32> to vector<2x128xf32>
    %289 = vector.extract_strided_slice %279 {offsets = [0, 128], sizes = [2, 128], strides = [1, 1]} : vector<2x384xf32> to vector<2x128xf32>
    %290 = arith.addf %288, %289 : vector<2x128xf32>
    %291 = arith.negf %290 : vector<2x128xf32>
    %292 = math.exp %291 : vector<2x128xf32>
    %cst_72 = arith.constant 1.000000e+00 : f32
    %293 = vector.broadcast %cst_72 : f32 to vector<2x128xf32>
    %294 = arith.addf %293, %292 : vector<2x128xf32>
    %295 = arith.divf %293, %294 : vector<2x128xf32>
    %296 = vector.extract_strided_slice %276 {offsets = [0, 256], sizes = [2, 128], strides = [1, 1]} : vector<2x384xf32> to vector<2x128xf32>
    %297 = vector.extract_strided_slice %279 {offsets = [0, 256], sizes = [2, 128], strides = [1, 1]} : vector<2x384xf32> to vector<2x128xf32>
    %298 = arith.mulf %287, %297 : vector<2x128xf32>
    %299 = arith.addf %296, %298 : vector<2x128xf32>
    %300 = math.tanh %299 : vector<2x128xf32>
    %cst_73 = arith.constant 1.000000e+00 : f32
    %301 = vector.broadcast %cst_73 : f32 to vector<2x128xf32>
    %302 = arith.subf %301, %295 : vector<2x128xf32>
    %303 = arith.mulf %302, %300 : vector<2x128xf32>
    %304 = arith.mulf %295, %262 : vector<2x128xf32>
    %305 = arith.addf %303, %304 : vector<2x128xf32>
    %c6 = arith.constant 6 : index
    %c0_74 = arith.constant 0 : index
    %c0_75 = arith.constant 0 : index
    %306 = vector.load %arg8[%c6, %c0_74, %c0_75] : memref<8x2x128xf32, #tpu.memory_space<vmem>>, vector<1x2x128xf32>
    %307 = vector.shape_cast %306 : vector<1x2x128xf32> to vector<2x128xf32>
    %308 = vector.shape_cast %305 : vector<2x128xf32> to vector<1x2x128xf32>
    tpu.vector_store %arg8[%c6, %c0_74, %c0_75], %308 {strides = array<i32>} : memref<8x2x128xf32, #tpu.memory_space<vmem>>, vector<1x2x128xf32>,
    %309 = vector.extract_strided_slice %5 {offsets = [0, 7], sizes = [2, 1], strides = [1, 1]} : vector<2x8xi32> to vector<2x1xi32>
    %310 = vector.broadcast %309 : vector<2x1xi32> to vector<2x16xi32>
    %311 = arith.cmpi eq, %310, %6 : vector<2x16xi32>
    %312 = arith.extui %311 : vector<2x16xi1> to vector<2x16xi32>
    %313 = arith.sitofp %312 : vector<2x16xi32> to vector<2x16xf32>
    %cst_76 = arith.constant dense<0.000000e+00> : vector<2x128xf32>
    %314 = tpu.matmul %313, %0, %cst_76 {dimension_numbers = #tpu.dot_dimension_numbers<[1], [0], [0], [1], [0, 0, 1, 1], [], []>} : vector<2x16xf32>, vector<16x128xf32>, vector<2x128xf32> -> vector<2x128xf32>
    %cst_77 = arith.constant 0.000000e+00 : f32
    %315 = vector.broadcast %cst_77 : f32 to vector<2x128xf32>
    %316 = arith.maximumf %314, %315 : vector<2x128xf32>
    %cst_78 = arith.constant dense<0.000000e+00> : vector<2x384xf32>
    %317 = tpu.matmul %316, %1, %cst_78 {dimension_numbers = #tpu.dot_dimension_numbers<[1], [0], [0], [1], [0, 0, 1, 1], [], []>} : vector<2x128xf32>, vector<128x384xf32>, vector<2x384xf32> -> vector<2x384xf32>
    %318 = vector.broadcast %3 : vector<1x384xf32> to vector<2x384xf32>
    %319 = arith.addf %317, %318 : vector<2x384xf32>
    %cst_79 = arith.constant dense<0.000000e+00> : vector<2x384xf32>
    %320 = tpu.matmul %305, %2, %cst_79 {dimension_numbers = #tpu.dot_dimension_numbers<[1], [0], [0], [1], [0, 0, 1, 1], [], []>} : vector<2x128xf32>, vector<128x384xf32>, vector<2x384xf32> -> vector<2x384xf32>
    %321 = vector.broadcast %4 : vector<1x384xf32> to vector<2x384xf32>
    %322 = arith.addf %320, %321 : vector<2x384xf32>
    %323 = vector.extract_strided_slice %319 {offsets = [0, 0], sizes = [2, 128], strides = [1, 1]} : vector<2x384xf32> to vector<2x128xf32>
    %324 = vector.extract_strided_slice %322 {offsets = [0, 0], sizes = [2, 128], strides = [1, 1]} : vector<2x384xf32> to vector<2x128xf32>
    %325 = arith.addf %323, %324 : vector<2x128xf32>
    %326 = arith.negf %325 : vector<2x128xf32>
    %327 = math.exp %326 : vector<2x128xf32>
    %cst_80 = arith.constant 1.000000e+00 : f32
    %328 = vector.broadcast %cst_80 : f32 to vector<2x128xf32>
    %329 = arith.addf %328, %327 : vector<2x128xf32>
    %330 = arith.divf %328, %329 : vector<2x128xf32>
    %331 = vector.extract_strided_slice %319 {offsets = [0, 128], sizes = [2, 128], strides = [1, 1]} : vector<2x384xf32> to vector<2x128xf32>
    %332 = vector.extract_strided_slice %322 {offsets = [0, 128], sizes = [2, 128], strides = [1, 1]} : vector<2x384xf32> to vector<2x128xf32>
    %333 = arith.addf %331, %332 : vector<2x128xf32>
    %334 = arith.negf %333 : vector<2x128xf32>
    %335 = math.exp %334 : vector<2x128xf32>
    %cst_81 = arith.constant 1.000000e+00 : f32
    %336 = vector.broadcast %cst_81 : f32 to vector<2x128xf32>
    %337 = arith.addf %336, %335 : vector<2x128xf32>
    %338 = arith.divf %336, %337 : vector<2x128xf32>
    %339 = vector.extract_strided_slice %319 {offsets = [0, 256], sizes = [2, 128], strides = [1, 1]} : vector<2x384xf32> to vector<2x128xf32>
    %340 = vector.extract_strided_slice %322 {offsets = [0, 256], sizes = [2, 128], strides = [1, 1]} : vector<2x384xf32> to vector<2x128xf32>
    %341 = arith.mulf %330, %340 : vector<2x128xf32>
    %342 = arith.addf %339, %341 : vector<2x128xf32>
    %343 = math.tanh %342 : vector<2x128xf32>
    %cst_82 = arith.constant 1.000000e+00 : f32
    %344 = vector.broadcast %cst_82 : f32 to vector<2x128xf32>
    %345 = arith.subf %344, %338 : vector<2x128xf32>
    %346 = arith.mulf %345, %343 : vector<2x128xf32>
    %347 = arith.mulf %338, %305 : vector<2x128xf32>
    %348 = arith.addf %346, %347 : vector<2x128xf32>
    %c7 = arith.constant 7 : index
    %c0_83 = arith.constant 0 : index
    %c0_84 = arith.constant 0 : index
    %349 = vector.load %arg8[%c7, %c0_83, %c0_84] : memref<8x2x128xf32, #tpu.memory_space<vmem>>, vector<1x2x128xf32>
    %350 = vector.shape_cast %349 : vector<1x2x128xf32> to vector<2x128xf32>
    %351 = vector.shape_cast %348 : vector<2x128xf32> to vector<1x2x128xf32>
    tpu.vector_store %arg8[%c7, %c0_83, %c0_84], %351 {strides = array<i32>} : memref<8x2x128xf32, #tpu.memory_space<vmem>>, vector<1x2x128xf32>,
    return
  }
  func.func @transform_0(%arg0: i32) -> (i32, i32) {
    %c0_i32 = arith.constant 0 : i32
    %c0_i32_0 = arith.constant 0 : i32
    return %arg0, %c0_i32 : i32, i32
  }
  func.func @transform_1(%arg0: i32) -> (i32, i32) {
    %c0_i32 = arith.constant 0 : i32
    %c0_i32_0 = arith.constant 0 : i32
    %c0_i32_1 = arith.constant 0 : i32
    return %c0_i32, %c0_i32_0 : i32, i32
  }
  func.func @transform_2(%arg0: i32) -> (i32, i32) {
    %c0_i32 = arith.constant 0 : i32
    %c0_i32_0 = arith.constant 0 : i32
    %c0_i32_1 = arith.constant 0 : i32
    return %c0_i32, %c0_i32_0 : i32, i32
  }
  func.func @transform_3(%arg0: i32) -> (i32, i32) {
    %c0_i32 = arith.constant 0 : i32
    %c0_i32_0 = arith.constant 0 : i32
    %c0_i32_1 = arith.constant 0 : i32
    return %c0_i32, %c0_i32_0 : i32, i32
  }
  func.func @transform_4(%arg0: i32) -> (i32, i32) {
    %c0_i32 = arith.constant 0 : i32
    %c0_i32_0 = arith.constant 0 : i32
    %c0_i32_1 = arith.constant 0 : i32
    return %c0_i32, %c0_i32_0 : i32, i32
  }
  func.func @transform_5(%arg0: i32) -> (i32, i32) {
    %c0_i32 = arith.constant 0 : i32
    %c0_i32_0 = arith.constant 0 : i32
    %c0_i32_1 = arith.constant 0 : i32
    return %c0_i32, %c0_i32_0 : i32, i32
  }
  func.func @transform_6(%arg0: i32) -> (i32, i32) {
    %c0_i32 = arith.constant 0 : i32
    %c0_i32_0 = arith.constant 0 : i32
    return %arg0, %c0_i32 : i32, i32
  }
  func.func @transform_7(%arg0: i32) -> (i32, i32, i32) {
    %c0_i32 = arith.constant 0 : i32
    %c0_i32_0 = arith.constant 0 : i32
    %c0_i32_1 = arith.constant 0 : i32
    return %c0_i32, %arg0, %c0_i32_0 : i32, i32, i32
  }
}

</mosaic_0001>

<bundles_post_ra>
// kernel: tpu_custom_call.1
= control target key start
LH: loop header
LB: loop body
LE: loop exit
PB: predicated region body
PF: predicated region fallthrough
CT: control target
= control target key end

     0   :  { %12 = vsyncpa [#allocation3], 0  ;;  %s6399_s0 = inlined_call_operand.hbm [shape: s32[2,8], index: 0, kind: input, shape index: {}]   ;;  %s6400_s1 = inlined_call_operand.hbm [shape: f32[16,128], index: 1, kind: input, shape index: {}]   ;;  %s6401_s2 = inlined_call_operand.hbm [shape: f32[128,384], index: 2, kind: input, shape index: {}]   ;;  %s6402_s3 = inlined_call_operand.hbm [shape: f32[128,384], index: 3, kind: input, shape index: {}]   ;;  %s6403_s4 = inlined_call_operand.vmem [shape: f32[1,384], index: 4, kind: input, shape index: {}]   ;;  %s6404_s5 = inlined_call_operand.vmem [shape: f32[1,384], index: 5, kind: input, shape index: {}]   ;;  %s6405_s6 = inlined_call_operand.vmem [shape: f32[2,128], index: 6, kind: input, shape index: {}]   ;;  %s6406_s7 = inlined_call_operand.hbm [shape: f32[8,2,128], index: 7, kind: output, shape index: {}]  }
   0x1   :  { %13 = vsyncpa [#allocation6], 0 }
   0x2   :  { %14 = vsyncpa [#allocation9], 0 }
   0x3   :  { %15 = vsyncpa [#allocation4], 0  ;;  %s5457_s24 = smov [#allocation5]   ;;  %s5339_s28 = scalar_lea.hbm %s6400_s1, 256 }
   0x4   :  { %s31_s25 = sshll.u32 %s5457_s24, 4  ;;  %p5340_p0 = scmp.ne.s32.totalorder %s6400_s1, %s5339_s28  ;;  %s32_s25 = int_to_ptr.vmem [resolvable:$true] %s31_s25 }
   0x5   :  { %p5343_p1 = scmp.lt.u32.totalorder %s5339_s28, %s6400_s1 }
   0x7   :  { %p5345_p2 = pnand %p5343_p1, %p5340_p0 }
   0x9   :  { %5348 = shalt.err (!%p5345_p2)
}
   0xa   :  { %s5349_s10 = scalar_lea.vmem %s32_s25, 256  ;;  %p5354_p4 = scmp.lt.s32.totalorder %s32_s25, %s32_s25 }
   0xb   :  { %p5350_p3 = scmp.ne.s32.totalorder %s32_s25, %s5349_s10  ;;  %p5355_p5 = scmp.lt.s32.totalorder %s5349_s10, %s5349_s10 }
   0xd   :  { %p5356_p6 = por %p5355_p5, %p5354_p4 }
   0xf   :  { %p5357_p7 = pnand %p5356_p6, %p5350_p3 }
  0x11   :  { %5360 = shalt.err (!%p5357_p7)
}
  0x12   :  { %s5458_s11 = smov 128   ;;  %s5459_s12 = smov 8  }
  0x13   :  { %37 = dma.hbm_to_vmem [thread:$0]  %s6400_s1, 256, %s32_s25, [#allocation6], %s5458_s11, %s5458_s11, %s5459_s12  }
  0x14   :  { %s5460_s15 = smov [#allocation2]   ;;  %s5461_s17 = smov [#allocation7]  }
  0x15   :  { %s22_s16 = sshll.u32 %s5460_s15, 4  ;;  %s43_s18 = sshll.u32 %s5461_s17, 4  ;;  %s23_s16 = int_to_ptr.vmem [resolvable:$true] %s22_s16  ;;  %s44_s18 = int_to_ptr.vmem [resolvable:$true] %s43_s18 }
  0x16   :  { %s5361_s21 = scalar_lea.hbm %s6399_s0, 32 }
  0x17   :  { %p5362_p8 = scmp.ne.s32.totalorder %s6399_s0, %s5361_s21  ;;  %p5365_p9 = scmp.lt.u32.totalorder %s5361_s21, %s6399_s0 }
  0x19   :  { %p5367_p10 = pnand %p5365_p9, %p5362_p8 }
  0x1b   :  { %5370 = shalt.err (!%p5367_p10)
}
  0x1c   :  { %s5371_s1 = scalar_lea.vmem %s23_s16, 32  ;;  %p5376_p12 = scmp.lt.s32.totalorder %s23_s16, %s23_s16 }
  0x1d   :  { %p5372_p11 = scmp.ne.s32.totalorder %s23_s16, %s5371_s1  ;;  %p5377_p13 = scmp.lt.s32.totalorder %s5371_s1, %s5371_s1 }
  0x1f   :  { %p5378_p0 = por %p5377_p13, %p5376_p12 }
  0x21   :  { %p5379_p1 = pnand %p5378_p0, %p5372_p11 }
  0x23   :  { %5382 = shalt.err (!%p5379_p1)
}
  0x24   :  { %25 = dma.hbm_to_vmem [thread:$0]  %s6399_s0, 32, %s23_s16, [#allocation3]  }
  0x25   :  { %s5383_s30 = scalar_lea.hbm %s6401_s2, 6144 }
  0x26   :  { %p5384_p2 = scmp.ne.s32.totalorder %s6401_s2, %s5383_s30  ;;  %p5387_p3 = scmp.lt.u32.totalorder %s5383_s30, %s6401_s2 }
  0x28   :  { %p5389_p4 = pnand %p5387_p3, %p5384_p2 }
  0x2a   :  { %5392 = shalt.err (!%p5389_p4)
}
  0x2b   :  { %s5393_s12 = scalar_lea.vmem %s44_s18, 6144  ;;  %p5398_p6 = scmp.lt.s32.totalorder %s44_s18, %s44_s18 }
  0x2c   :  { %p5394_p5 = scmp.ne.s32.totalorder %s44_s18, %s5393_s12  ;;  %p5399_p7 = scmp.lt.s32.totalorder %s5393_s12, %s5393_s12 }
  0x2e   :  { %p5400_p8 = por %p5399_p7, %p5398_p6 }
  0x30   :  { %p5401_p9 = pnand %p5400_p8, %p5394_p5 }
  0x32   :  { %5404 = shalt.err (!%p5401_p9)
}
  0x33   :  { %s5462_s0 = smov 384   ;;  %s5463_s13 = smov 24  }
  0x34   :  { %49 = dma.hbm_to_vmem [thread:$0]  %s6401_s2, 6144, %s44_s18, [#allocation6], %s5462_s0, %s5462_s0, %s5463_s13  }
  0x35   :  { %s5464_s16 = smov [#allocation8]   ;;  %s5405_s21 = scalar_lea.hbm %s6402_s3, 6144 }
  0x36   :  { %s55_s17 = sshll.u32 %s5464_s16, 4  ;;  %p5406_p10 = scmp.ne.s32.totalorder %s6402_s3, %s5405_s21  ;;  %s56_s17 = int_to_ptr.vmem [resolvable:$true] %s55_s17 }
  0x37   :  { %p5409_p11 = scmp.lt.u32.totalorder %s5405_s21, %s6402_s3 }
  0x39   :  { %p5411_p12 = pnand %p5409_p11, %p5406_p10 }
  0x3b   :  { %5414 = shalt.err (!%p5411_p12)
}
  0x3c   :  { %s5415_s1 = scalar_lea.vmem %s56_s17, 6144  ;;  %p5420_p0 = scmp.lt.s32.totalorder %s56_s17, %s56_s17 }
  0x3d   :  { %p5416_p13 = scmp.ne.s32.totalorder %s56_s17, %s5415_s1  ;;  %p5421_p1 = scmp.lt.s32.totalorder %s5415_s1, %s5415_s1 }
  0x3f   :  { %p5422_p2 = por %p5421_p1, %p5420_p0 }
  0x41   :  { %p5423_p3 = pnand %p5422_p2, %p5416_p13 }
  0x43   :  { %5426 = shalt.err (!%p5423_p3)
}
  0x44   :  { %61 = dma.hbm_to_vmem [thread:$0]  %s6402_s3, 6144, %s56_s17, [#allocation9], %s5462_s0, %s5462_s0, %s5463_s13  }
  0x45   :  { %5449 = dma.done.wait [#allocation3], 32  }
  0x46   :  { %5450 = vsyncadd [#allocation3], 4294967264 }
  0x47   :  { %5451 = dma.done.wait [#allocation6], 6400  }
  0x48   :  { %5452 = vsyncadd [#allocation6], 4294960896 }
  0x49   :  { %5453 = dma.done.wait [#allocation9], 6144  }
  0x4a   :  { %5454 = vsyncadd [#allocation9], 4294961152  ;;  %v5465_v0 = vmov 0   ;;  %v6409_v1 = vmov 0.0|0.0   ;;  %v6407_v2 = vmov 0.0   ;;  %v80_v4 = vld [vmem:[#allocation5] sm:$0xff]  ;;  %v181_v56 = vlaneseq }
  0x4b   :  { %5249 = vset.pattern.permute.xlu0 %v5465_v0  ;;  %4259 = vmatprep.subr.bf16.mxu0 %v6409_v1  ;;  %v5569_v3 = vld [vmem:[#allocation2] sm:$0x3]  ;;  %v81_v5 = vld [vmem:[#allocation5 + $0x8] sm:$0xff]  ;;  %vm5468_vm0 = vmmov 0   ;;  %v86_v8 = vld [vmem:[#allocation7 + $0x20] sm:$0xff]  ;;  %v5469_v12 = vmov 1  }
  0x4c   :  { %345 = vmatprep.mubr.f32.mxu1 %v6407_v2  ;;  %6430 = vst [vmem:[#allocation15_spill] sm:$0xff] %v5569_v3  ;;  %185 = vperm.xlu0 %5249, %v5569_v3   ;;  %v5572_v6 = vpack.c.bf16 %v81_v5, %v80_v4  ;;  %v83_v7 = vld [vmem:[#allocation7 + $0x8] sm:$0xff]  ;;  %v82_v9 = vld [vmem:[#allocation7] sm:$0xff]  ;;  %v85_v11 = vld [vmem:[#allocation7 + $0x18] sm:$0xff]  ;;  %v5628_v57 = vand.u32 127, %v181_v56  ;;  %vm190_vm1 = vcmask 130048  }
  0x4d   :  { %3647 = vmatprep.mubr.msk.f32.mxu0 %vm5468_vm0, %v6407_v2  ;;  %v5577_v10 = vpack.c.bf16 %v86_v8, %v83_v7  ;;  %v5580_v13 = vpack.c.bf16 %v85_v11, %v82_v9  ;;  %v89_v14 = vld [vmem:[#allocation7 + $0x38] sm:$0xff]  ;;  %v92_v15 = vld [vmem:[#allocation7 + $0x50] sm:$0xff]  ;;  %v91_v18 = vld [vmem:[#allocation7 + $0x48] sm:$0xff] }
  0x4e   :  { %4261 = vmatpush3.bf16.msra.mxu0 %v5572_v6  ;;  %v88_v16 = vld [vmem:[#allocation7 + $0x30] sm:$0xff]  ;;  %v5584_v17 = vpack.c.bf16 %v92_v15, %v89_v14  ;;  %v95_v20 = vld [vmem:[#allocation7 + $0x68] sm:$0xff]  ;;  %v98_v21 = vld [vmem:[#allocation7 + $0x80] sm:$0xff] }
  0x4f   :  { %4294 = vmatprep.subr.bf16.mxu0 %v6409_v1  ;;  %4263 = vmatprep.subr.bf16.mxu1 %v5577_v10  ;;  %v5587_v19 = vpack.c.bf16 %v91_v18, %v88_v16  ;;  %v94_v22 = vld [vmem:[#allocation7 + $0x60] sm:$0xff]  ;;  %v5590_v23 = vpack.c.bf16 %v98_v21, %v95_v20  ;;  %v97_v24 = vld [vmem:[#allocation7 + $0x78] sm:$0xff]  ;;  %v104_v27 = vld [vmem:[#allocation7 + $0xb0] sm:$0xff] }
  0x50   :  { %5250 = vset.pattern.permute.xlu0 %v5469_v12  ;;  %4265 = vmatpush1.bf16.msra.mxu1 %v5580_v13  ;;  %v5593_v25 = vpack.c.bf16 %v97_v24, %v94_v22  ;;  %v101_v26 = vld [vmem:[#allocation7 + $0x98] sm:$0xff]  ;;  %v100_v28 = vld [vmem:[#allocation7 + $0x90] sm:$0xff]  ;;  %v103_v30 = vld [vmem:[#allocation7 + $0xa8] sm:$0xff] }
  0x51   :  { %602 = vperm.xlu0 %5250, %v5569_v3   ;;  %4267 = vmatprep.subr.bf16.mxu1 %v5584_v17  ;;  %v5596_v29 = vpack.c.bf16 %v104_v27, %v101_v26  ;;  %v5599_v31 = vpack.c.bf16 %v103_v30, %v100_v28  ;;  %v107_v32 = vld [vmem:[#allocation7 + $0xc8] sm:$0xff]  ;;  %v110_v33 = vld [vmem:[#allocation7 + $0xe0] sm:$0xff]  ;;  %v109_v36 = vld [vmem:[#allocation7 + $0xd8] sm:$0xff] }
  0x52   :  { %v106_v34 = vld [vmem:[#allocation7 + $0xc0] sm:$0xff]  ;;  %v5602_v35 = vpack.c.bf16 %v110_v33, %v107_v32  ;;  %v113_v38 = vld [vmem:[#allocation7 + $0xf8] sm:$0xff]  ;;  %v116_v39 = vld [vmem:[#allocation7 + $0x110] sm:$0xff] }
  0x53   :  { %v5605_v37 = vpack.c.bf16 %v109_v36, %v106_v34  ;;  %v112_v40 = vld [vmem:[#allocation7 + $0xf0] sm:$0xff]  ;;  %v5608_v41 = vpack.c.bf16 %v116_v39, %v113_v38  ;;  %v115_v42 = vld [vmem:[#allocation7 + $0x108] sm:$0xff]  ;;  %v122_v45 = vld [vmem:[#allocation7 + $0x140] sm:$0xff]  ;;  %v5470_v36 = vmov 2  }
  0x54   :  { %4269 = vmatpush1.bf16.msra.mxu1 %v5587_v19  ;;  %v5611_v43 = vpack.c.bf16 %v115_v42, %v112_v40  ;;  %v119_v44 = vld [vmem:[#allocation7 + $0x128] sm:$0xff]  ;;  %v118_v46 = vld [vmem:[#allocation7 + $0x120] sm:$0xff]  ;;  %v121_v48 = vld [vmem:[#allocation7 + $0x138] sm:$0xff]  ;;  %5251 = vset.pattern.permute.xlu1 %v5470_v36 }
  0x55   :  { %4271 = vmatprep.subr.bf16.mxu1 %v5590_v23  ;;  %v5614_v47 = vpack.c.bf16 %v122_v45, %v119_v44  ;;  %v5617_v49 = vpack.c.bf16 %v121_v48, %v118_v46  ;;  %v125_v50 = vld [vmem:[#allocation7 + $0x158] sm:$0xff]  ;;  %v128_v51 = vld [vmem:[#allocation7 + $0x170] sm:$0xff]  ;;  %v127_v54 = vld [vmem:[#allocation7 + $0x168] sm:$0xff]  ;;  %987 = vperm.xlu1 %5251, %v5569_v3  }
  0x56   :  { %6431 = vst [vmem:[#allocation16_spill] sm:$0xff] %v5611_v43  ;;  %v124_v52 = vld [vmem:[#allocation7 + $0x150] sm:$0xff]  ;;  %v5620_v53 = vpack.c.bf16 %v128_v51, %v125_v50  ;;  %v87_v59 = vld [vmem:[#allocation7 + $0x28] sm:$0xff]  ;;  %v90_v62 = vld [vmem:[#allocation7 + $0x40] sm:$0xff] }
  0x57   :  { %6432 = vst [vmem:[#allocation17_spill] sm:$0xff] %v5614_v47  ;;  %6433 = vst [vmem:[#allocation18_spill] sm:$0xff] %v5617_v49  ;;  %v5623_v55 = vpack.c.bf16 %v127_v54, %v124_v52  ;;  %v84_v58 = vld [vmem:[#allocation7 + $0x10] sm:$0xff]  ;;  %v93_v63 = vld [vmem:[#allocation7 + $0x58] sm:$0xff] }
  0x58   :  { %4273 = vmatpush1.bf16.msra.mxu1 %v5593_v25  ;;  %6434 = vst [vmem:[#allocation19_spill] sm:$0xff] %v5620_v53  ;;  %v5630_v61 = vpack.c.bf16 %v87_v59, %v84_v58  ;;  %v5636_v4 = vpack.c.bf16 %v93_v63, %v90_v62  ;;  %v96_v5 = vld [vmem:[#allocation7 + $0x70] sm:$0xff]  ;;  %v99_v7 = vld [vmem:[#allocation7 + $0x88] sm:$0xff]  ;;  %v102_v9 = vld [vmem:[#allocation7 + $0xa0] sm:$0xff] }
  0x59   :  { %4275 = vmatprep.subr.bf16.mxu1 %v5596_v29  ;;  %6435 = vst [vmem:[#allocation20_spill] sm:$0xff] %v5623_v55  ;;  %v5642_v8 = vpack.c.bf16 %v99_v7, %v96_v5  ;;  %v105_v11 = vld [vmem:[#allocation7 + $0xb8] sm:$0xff]  ;;  %v108_v14 = vld [vmem:[#allocation7 + $0xd0] sm:$0xff]  ;;  %v111_v15 = vld [vmem:[#allocation7 + $0xe8] sm:$0xff] }
  0x5a   :  { %v5646_v12 = vpack.c.bf16 %v105_v11, %v102_v9  ;;  %v5650_v16 = vpack.c.bf16 %v111_v15, %v108_v14  ;;  %v114_v18 = vld [vmem:[#allocation7 + $0x100] sm:$0xff]  ;;  %v117_v20 = vld [vmem:[#allocation7 + $0x118] sm:$0xff]  ;;  %v120_v22 = vld [vmem:[#allocation7 + $0x130] sm:$0xff] }
  0x5b   :  { %v5654_v21 = vpack.c.bf16 %v117_v20, %v114_v18  ;;  %v123_v24 = vld [vmem:[#allocation7 + $0x148] sm:$0xff]  ;;  %v126_v27 = vld [vmem:[#allocation7 + $0x160] sm:$0xff]  ;;  %v129_v28 = vld [vmem:[#allocation7 + $0x178] sm:$0xff] }
  0x5c   :  { %4277 = vmatpush1.bf16.msra.mxu1 %v5599_v31  ;;  %v5658_v26 = vpack.c.bf16 %v123_v24, %v120_v22  ;;  %v5663_v30 = vpack.c.bf16 %v129_v28, %v126_v27  ;;  %v131_v32 = vld [vmem:[#allocation8 + $0x8] sm:$0xff]  ;;  %v134_v33 = vld [vmem:[#allocation8 + $0x20] sm:$0xff]  ;;  %v133_v39 = vld [vmem:[#allocation8 + $0x18] sm:$0xff] }
  0x5d   :  { %4279 = vmatprep.subr.bf16.mxu1 %v5602_v35  ;;  %6436 = vst [vmem:[#allocation21_spill] sm:$0xff] %v5654_v21  ;;  %v5666_v34 = vpack.c.bf16 %v134_v33, %v131_v32  ;;  %v130_v38 = vld [vmem:[#allocation8] sm:$0xff]  ;;  %v132_v40 = vld [vmem:[#allocation8 + $0x10] sm:$0xff]  ;;  %v135_v42 = vld [vmem:[#allocation8 + $0x28] sm:$0xff] }
  0x5e   :  { %6437 = vst [vmem:[#allocation22_spill] sm:$0xff] %v5658_v26  ;;  %6438 = vst [vmem:[#allocation23_spill] sm:$0xff] %v5663_v30  ;;  %v137_v44 = vld [vmem:[#allocation8 + $0x38] sm:$0xff]  ;;  %v140_v45 = vld [vmem:[#allocation8 + $0x50] sm:$0xff]  ;;  %v5671_v48 = vpack.c.bf16 %v133_v39, %v130_v38  ;;  %v5673_v51 = vpack.c.bf16 %v135_v42, %v132_v40 }
  0x5f   :  { %6439 = vst [vmem:[#allocation24_spill] sm:$0xff] %v5666_v34  ;;  %v136_v50 = vld [vmem:[#allocation8 + $0x30] sm:$0xff]  ;;  %v5675_v58 = vpack.c.bf16 %v140_v45, %v137_v44  ;;  %v139_v59 = vld [vmem:[#allocation8 + $0x48] sm:$0xff]  ;;  %v141_v62 = vld [vmem:[#allocation8 + $0x58] sm:$0xff] }
  0x60   :  { %4281 = vmatpush1.bf16.msra.mxu1 %v5605_v37  ;;  %v143_v63 = vld [vmem:[#allocation8 + $0x68] sm:$0xff]  ;;  %v5678_v5 = vpack.c.bf16 %v139_v59, %v136_v50  ;;  %v142_v7 = vld [vmem:[#allocation8 + $0x60] sm:$0xff]  ;;  %v145_v14 = vld [vmem:[#allocation8 + $0x78] sm:$0xff] }
  0x61   :  { %4283 = vmatprep.subr.bf16.mxu1 %v5608_v41  ;;  %v144_v15 = vld [vmem:[#allocation8 + $0x70] sm:$0xff]  ;;  %v147_v18 = vld [vmem:[#allocation8 + $0x88] sm:$0xff]  ;;  %v149_v20 = vld [vmem:[#allocation8 + $0x98] sm:$0xff]  ;;  %v5691_v24 = vpack.c.bf16 %v145_v14, %v142_v7 }
  0x62   :  { %v152_v22 = vld [vmem:[#allocation8 + $0xb0] sm:$0xff]  ;;  %v5694_v28 = vpack.c.bf16 %v147_v18, %v144_v15  ;;  %v151_v33 = vld [vmem:[#allocation8 + $0xa8] sm:$0xff]  ;;  %v150_v36 = vld [vmem:[#allocation8 + $0xa0] sm:$0xff] }
  0x63   :  { %v148_v27 = vld [vmem:[#allocation8 + $0x90] sm:$0xff]  ;;  %v5697_v32 = vpack.c.bf16 %v152_v22, %v149_v20  ;;  %v153_v38 = vld [vmem:[#allocation8 + $0xb8] sm:$0xff]  ;;  %v155_v39 = vld [vmem:[#allocation8 + $0xc8] sm:$0xff] }
  0x64   :  { %4285 = vmatpush1.bf16.msra.mxu1 %v5611_v43  ;;  %v158_v40 = vld [vmem:[#allocation8 + $0xe0] sm:$0xff]  ;;  %v5701_v42 = vpack.c.bf16 %v151_v33, %v148_v27  ;;  %v5704_v45 = vpack.c.bf16 %v153_v38, %v150_v36  ;;  %v157_v50 = vld [vmem:[#allocation8 + $0xd8] sm:$0xff]  ;;  %v163_v14 = vld [vmem:[#allocation8 + $0x108] sm:$0xff] }
  0x65   :  { %4287 = vmatprep.subr.bf16.mxu1 %v5614_v47  ;;  %v154_v44 = vld [vmem:[#allocation8 + $0xc0] sm:$0xff]  ;;  %v161_v59 = vld [vmem:[#allocation8 + $0xf8] sm:$0xff]  ;;  %v167_v20 = vld [vmem:[#allocation8 + $0x128] sm:$0xff] }
  0x66   :  { %v162_v15 = vld [vmem:[#allocation8 + $0x100] sm:$0xff]  ;;  %v165_v18 = vld [vmem:[#allocation8 + $0x118] sm:$0xff] }
  0x67   :  { %v170_v22 = vld [vmem:[#allocation8 + $0x140] sm:$0xff]  ;;  %v5724_v36 = vpack.c.bf16 %v165_v18, %v162_v15  ;;  %v177_v18 = vld [vmem:[#allocation8 + $0x178] sm:$0xff] }
  0x68   :  { %4289 = vmatpush1.bf16.msra.mxu1 %v5617_v49  ;;  %v166_v33 = vld [vmem:[#allocation8 + $0x120] sm:$0xff]  ;;  %v5727_v38 = vpack.c.bf16 %v170_v22, %v167_v20 }
  0x69   :  { %4291 = vmatprep.subr.bf16.mxu1 %v5620_v53  ;;  %v174_v15 = vld [vmem:[#allocation8 + $0x160] sm:$0xff] }
  0x6a   :  { %v5744_v22 = vpack.c.bf16 %v177_v18, %v174_v15  ;;  %v179_v15 = vld [vmem:[%s6404_s5] sm:$0x7] }
  0x6b   :  { %v178_v18 = vld [vmem:[%s6403_s4] sm:$0x7]  ;;  %s5476_s4 = smov [#allocation10]  }
  0x6c   :  { %4293 = vmatpush1.bf16.msra.mxu1 %v5623_v55  ;;  %s3301_s5 = sshll.u32 %s5476_s4, 4  ;;  %s3302_s5 = int_to_ptr.vmem [resolvable:$true] %s3301_s5 }
  0x6d   :  { %4319 = vmatprep.subr.bf16.mxu1 %v5666_v34  ;;  %s5427_s30 = scalar_lea.vmem %s3302_s5, 256  ;;  %p5432_p5 = scmp.lt.s32.totalorder %s3302_s5, %s3302_s5 }
  0x6e   :  { %p5428_p4 = scmp.ne.s32.totalorder %s3302_s5, %s5427_s30  ;;  %p5433_p6 = scmp.lt.s32.totalorder %s5427_s30, %s5427_s30 }
  0x70   :  { %p5434_p7 = por %p5433_p6, %p5432_p5 }
  0x72   :  { %p5435_p8 = pnand %p5434_p7, %p5428_p4 }
  0xcb   :  { %v186_v60 = vpop.permute.xlu0 %185 }
  0xcc   :  { %vm187_vm2 = vcmp.eq.s32.totalorder %v186_v60, %v5628_v57  ;;  %v138_v60 = vld [vmem:[#allocation8 + $0x40] sm:$0xff] }
  0xcd   :  { %v3315_v0 = vsel %vm187_vm2, 1.0, %v6407_v2  ;;  %v5681_v9 = vpack.c.bf16 %v141_v62, %v138_v60  ;;  %v164_v60 = vld [vmem:[#allocation8 + $0x110] sm:$0xff]  ;;  %v5711_v62 = vpack.c.bf16 %v157_v50, %v154_v44  ;;  %v171_v44 = vld [vmem:[#allocation8 + $0x148] sm:$0xff]  ;;  %v173_v50 = vld [vmem:[#allocation8 + $0x158] sm:$0xff] }
  0xce   :  { %3648 = vmatmul.mubr.msk.f32.vlgmr.msra.gmra.mrb[0].mxu0 %vm190_vm1, %v3315_v0  ;;  %v146_v0 = vld [vmem:[#allocation8 + $0x80] sm:$0xff]  ;;  %v5717_v7 = vpack.c.bf16 %v164_v60, %v161_v59  ;;  %v172_v59 = vld [vmem:[#allocation8 + $0x150] sm:$0xff] }
  0xcf   :  { %4296 = vmatpush3.bf16.msra.mxu0 %v5630_v61  ;;  %3682 = vmatprep.mubr.msk.f32.mxu0 %vm5468_vm0, %v6407_v2  ;;  %v5684_v11 = vpack.c.bf16 %v146_v0, %v143_v63  ;;  %v160_v63 = vld [vmem:[#allocation8 + $0xf0] sm:$0xff] }
  0xd0   :  { %4297 = vmatprep.subr.bf16.mxu0 %v6409_v1  ;;  %v5721_v27 = vpack.c.bf16 %v163_v14, %v160_v63  ;;  %v175_v14 = vld [vmem:[#allocation8 + $0x168] sm:$0xff] }
  0xd1   :  { %v5741_v20 = vpack.c.bf16 %v175_v14, %v172_v59  ;;  %v267_v59 = vshrl.u32 %v181_v56, 7 }
  0xd3   :  { %4299 = vmatpush3.bf16.msra.mxu0 %v5636_v4  ;;  %v268_v14 = vsub.s32 0, %v267_v59 }
  0xd4   :  { %4300 = vmatprep.subr.bf16.mxu0 %v6409_v1 }
  0xd7   :  { %4302 = vmatpush3.bf16.msra.mxu0 %v5642_v8 }
  0xd8   :  { %4303 = vmatprep.subr.bf16.mxu0 %v6409_v1 }
  0xdb   :  { %4305 = vmatpush3.bf16.msra.mxu0 %v5646_v12 }
  0xdc   :  { %4306 = vmatprep.subr.bf16.mxu0 %v6409_v1 }
  0xdf   :  { %4308 = vmatpush3.bf16.msra.mxu0 %v5650_v16 }
  0xe0   :  { %4309 = vmatprep.subr.bf16.mxu0 %v6409_v1 }
  0xe3   :  { %4311 = vmatpush3.bf16.msra.mxu0 %v5654_v21 }
  0xe4   :  { %4312 = vmatprep.subr.bf16.mxu0 %v6409_v1 }
  0xe7   :  { %4314 = vmatpush3.bf16.msra.mxu0 %v5658_v26 }
  0xe8   :  { %4315 = vmatprep.subr.bf16.mxu0 %v6409_v1 }
  0xeb   :  { %4317 = vmatpush3.bf16.msra.mxu0 %v5663_v30 }
  0xec   :  { %4350 = vmatprep.subr.bf16.mxu0 %v6409_v1 }
 0x1a1   :  { %v260_v46 = vpop.f32.mrb[0].mxu0 }
 0x1a2   :  { %v264_v52 = vmax.f32 %v260_v46, 0.0  ;;  %v3649_v54 = vpop.f32.mrb[1].mxu0  ;;  %v5707_v46 = vpack.c.bf16 %v158_v40, %v155_v39  ;;  %v169_v39 = vld [vmem:[#allocation8 + $0x138] sm:$0xff]  ;;  %v168_v40 = vld [vmem:[#allocation8 + $0x130] sm:$0xff] }
 0x1a3   :  { %v159_v54 = vld [vmem:[#allocation8 + $0xe8] sm:$0xff]  ;;  %v5734_v60 = vpack.c.bf16 %v171_v44, %v168_v40  ;;  %v5471_v44 = vmov 3  }
 0x1a4   :  { %346 = vmatmul.mubr.f32.vlgmr.msra.gmra.mrb[0].mxu1 %v264_v52  ;;  %3683 = vmatmul.mubr.f32.vlgmr.msra.gmra.mrb[2].mxu0 %v264_v52  ;;  %v156_v52 = vld [vmem:[#allocation8 + $0xd0] sm:$0xff] }
 0x1a5   :  { %4321 = vmatpush1.bf16.msra.mxu1 %v5671_v48  ;;  %4352 = vmatpush3.bf16.msra.mxu0 %v5673_v51  ;;  %v5714_v0 = vpack.c.bf16 %v159_v54, %v156_v52  ;;  %v176_v52 = vld [vmem:[#allocation8 + $0x170] sm:$0xff]  ;;  %v5731_v54 = vpack.c.bf16 %v169_v39, %v166_v33  ;;  %v603_v33 = vpop.permute.xlu0 %602  ;;  %v5752_v39 = vld [vmem:[%s6405_s6] sm:$0x3] }
 0x1a6   :  { %4323 = vmatprep.subr.bf16.mxu1 %v5675_v58  ;;  %4353 = vmatprep.subr.bf16.mxu0 %v6409_v1  ;;  %v5737_v63 = vpack.c.bf16 %v176_v52, %v173_v50  ;;  %vm604_vm3 = vcmp.eq.s32.totalorder %v603_v33, %v5628_v57  ;;  %v272_v33 = vsub.s32 1, %v267_v59 }
 0x1a7   :  { %502 = vmatprep.mubr.f32.mxu1 %v6407_v2  ;;  %3717 = vmatprep.mubr.msk.f32.mxu0 %vm5468_vm0, %v6407_v2  ;;  %v3319_v40 = vsel %vm604_vm3, 1.0, %v6407_v2 }
 0x1a8   :  { %5252 = vset.pattern.permute.xlu1 %v5471_v44  ;;  %v430_v44 = vrot.slane %v179_v15, %v272_v33 }
 0x1a9   :  { %4325 = vmatpush1.bf16.msra.mxu1 %v5678_v5  ;;  %4355 = vmatpush3.bf16.msra.mxu0 %v5681_v9 }
 0x1aa   :  { %4327 = vmatprep.subr.bf16.mxu1 %v5684_v11  ;;  %4356 = vmatprep.subr.bf16.mxu0 %v6409_v1 }
 0x1ab   :  { %1372 = vperm.xlu1 %5252, %v5569_v3  }
 0x1ad   :  { %4329 = vmatpush1.bf16.msra.mxu1 %v5691_v24  ;;  %4358 = vmatpush3.bf16.msra.mxu0 %v5694_v28 }
 0x1ae   :  { %4331 = vmatprep.subr.bf16.mxu1 %v5697_v32  ;;  %4359 = vmatprep.subr.bf16.mxu0 %v6409_v1 }
 0x1b1   :  { %4333 = vmatpush1.bf16.msra.mxu1 %v5701_v42  ;;  %4361 = vmatpush3.bf16.msra.mxu0 %v5704_v45 }
 0x1b2   :  { %4335 = vmatprep.subr.bf16.mxu1 %v5707_v46  ;;  %4362 = vmatprep.subr.bf16.mxu0 %v6409_v1 }
 0x1b5   :  { %4337 = vmatpush1.bf16.msra.mxu1 %v5711_v62  ;;  %4364 = vmatpush3.bf16.msra.mxu0 %v5714_v0 }
 0x1b6   :  { %4339 = vmatprep.subr.bf16.mxu1 %v5717_v7  ;;  %4365 = vmatprep.subr.bf16.mxu0 %v6409_v1 }
 0x1b9   :  { %4341 = vmatpush1.bf16.msra.mxu1 %v5721_v27  ;;  %4367 = vmatpush3.bf16.msra.mxu0 %v5724_v36 }
 0x1ba   :  { %4343 = vmatprep.subr.bf16.mxu1 %v5727_v38  ;;  %4368 = vmatprep.subr.bf16.mxu0 %v6409_v1 }
 0x1bd   :  { %4345 = vmatpush1.bf16.msra.mxu1 %v5731_v54  ;;  %4370 = vmatpush3.bf16.msra.mxu0 %v5734_v60 }
 0x1be   :  { %4347 = vmatprep.subr.bf16.mxu1 %v5737_v63  ;;  %4371 = vmatprep.subr.bf16.mxu0 %v6409_v1 }
 0x1c1   :  { %4349 = vmatpush1.bf16.msra.mxu1 %v5741_v20  ;;  %4373 = vmatpush3.bf16.msra.mxu0 %v5744_v22 }
 0x1c2   :  { %4374 = vmatprep.subr.bf16.mxu1 %v6409_v1  ;;  %4378 = vmatprep.subr.bf16.mxu0 %v5577_v10 }
 0x1c4   :  { %503 = vmatmul.mubr.f32.vlgmr.msra.gmra.mrb[0].mxu1 %v5752_v39  ;;  %3718 = vmatmul.mubr.f32.vlgmr.msra.gmra.mrb[4].mxu0 %v5752_v39 }
 0x1c5   :  { %4376 = vmatpush3.bf16.msra.mxu1 %v5572_v6  ;;  %3724 = vmatprep.mubr.msk.f32.mxu1 %vm5468_vm0, %v6407_v2 }
 0x1c6   :  { %4409 = vmatprep.subr.bf16.mxu1 %v6409_v1  ;;  %4380 = vmatpush1.bf16.msra.mxu0 %v5580_v13 }
 0x1c7   :  { %4382 = vmatprep.subr.bf16.mxu0 %v5584_v17  ;;  %745 = vmatprep.mubr.f32.mxu0 %v6407_v2 }
 0x1c8   :  { %3725 = vmatmul.mubr.msk.f32.vlgmr.msra.gmra.mrb[2].mxu1 %vm190_vm1, %v3319_v40  ;;  %v269_v40 = vrot.slane %v178_v18, %v268_v14 }
 0x1c9   :  { %4411 = vmatpush3.bf16.msra.mxu1 %v5630_v61  ;;  %3759 = vmatprep.mubr.msk.f32.mxu1 %vm5468_vm0, %v6407_v2  ;;  %v426_v2 = vrot.slane %v179_v15, %v268_v14 }
 0x1ca   :  { %4412 = vmatprep.subr.bf16.mxu1 %v6409_v1  ;;  %4384 = vmatpush1.bf16.msra.mxu0 %v5587_v19 }
 0x1cb   :  { %4386 = vmatprep.subr.bf16.mxu0 %v5590_v23 }
 0x1cd   :  { %4414 = vmatpush3.bf16.msra.mxu1 %v5636_v4 }
 0x1ce   :  { %4415 = vmatprep.subr.bf16.mxu1 %v6409_v1  ;;  %4388 = vmatpush1.bf16.msra.mxu0 %v5593_v25 }
 0x1cf   :  { %4390 = vmatprep.subr.bf16.mxu0 %v5596_v29 }
 0x1d1   :  { %4417 = vmatpush3.bf16.msra.mxu1 %v5642_v8 }
 0x1d2   :  { %4418 = vmatprep.subr.bf16.mxu1 %v6409_v1  ;;  %4392 = vmatpush1.bf16.msra.mxu0 %v5599_v31 }
 0x1d3   :  { %4394 = vmatprep.subr.bf16.mxu0 %v5602_v35 }
 0x1d5   :  { %4420 = vmatpush3.bf16.msra.mxu1 %v5646_v12 }
 0x1d6   :  { %4421 = vmatprep.subr.bf16.mxu1 %v6409_v1  ;;  %4396 = vmatpush1.bf16.msra.mxu0 %v5605_v37 }
 0x1d7   :  { %4398 = vmatprep.subr.bf16.mxu0 %v5608_v41 }
 0x1d9   :  { %4423 = vmatpush3.bf16.msra.mxu1 %v5650_v16 }
 0x1da   :  { %4424 = vmatprep.subr.bf16.mxu1 %v6409_v1  ;;  %4400 = vmatpush1.bf16.msra.mxu0 %v5611_v43 }
 0x1db   :  { %4402 = vmatprep.subr.bf16.mxu0 %v5614_v47 }
 0x1dd   :  { %4426 = vmatpush3.bf16.msra.mxu1 %v5654_v21 }
 0x1de   :  { %4427 = vmatprep.subr.bf16.mxu1 %v6409_v1  ;;  %4404 = vmatpush1.bf16.msra.mxu0 %v5617_v49 }
 0x1df   :  { %4406 = vmatprep.subr.bf16.mxu0 %v5620_v53 }
 0x1e1   :  { %4429 = vmatpush3.bf16.msra.mxu1 %v5658_v26 }
 0x1e2   :  { %4430 = vmatprep.subr.bf16.mxu1 %v6409_v1  ;;  %4408 = vmatpush1.bf16.msra.mxu0 %v5623_v55 }
 0x1e3   :  { %4434 = vmatprep.subr.bf16.mxu0 %v5666_v34 }
 0x1e5   :  { %4432 = vmatpush3.bf16.msra.mxu1 %v5663_v30  ;;  %v5809_v30 = vadd.f32 %v426_v2, %v269_v40  ;;  %v6441_v2 = vmov 0.0  }
 0x1e6   :  { %4465 = vmatprep.subr.bf16.mxu1 %v6409_v1  ;;  %v273_v1 = vrot.slane %v178_v18, %v272_v33 }
 0x277   :  { %v418_v50 = vpop.f32.mrb[2].mxu0 }
 0x278   :  { %v3684_v52 = vpop.f32.mrb[3].mxu0 }
 0x279   :  { %v5811_v52 = vadd.f32 %v430_v44, %v273_v1  ;;  %v6440_v1 = vmov 0.0|0.0   ;;  %v988_v44 = vpop.permute.xlu1 %987 }
 0x27a   :  { %vm989_vm4 = vcmp.eq.s32.totalorder %v988_v44, %v5628_v57 }
 0x297   :  { %v504_v3 = vpop.f32.mrb[0].mxu1  ;;  %v575_v56 = vpop.f32.mrb[4].mxu0 }
 0x298   :  { %v5180_v34 = vadd.f32 %v5809_v30, %v504_v3  ;;  %v506_v55 = vpop.f32.mrb[1].mxu1  ;;  %v3719_v26 = vpop.f32.mrb[5].mxu0 }
 0x299   :  { %v5182_v49 = vadd.f32 %v5811_v52, %v506_v55 }
 0x29a   :  { %v3317_v53 = vmul.f32 -1.442695, %v5180_v34 }
 0x29b   :  { %v676_v21 = vpop.f32.mrb[2].mxu1  ;;  %v3318_v14 = vmul.f32 -1.442695, %v5182_v49 }
 0x29c   :  { %5258 = vpow2.f32 %v3317_v53  ;;  %v680_v47 = vmax.f32 %v676_v21, 0.0  ;;  %v3726_v43 = vpop.f32.mrb[3].mxu1 }
 0x29d   :  { %5260 = vpow2.f32 %v3318_v14 }
 0x29e   :  { %3760 = vmatmul.mubr.f32.vlgmr.msra.gmra.mrb[4].mxu1 %v680_v47  ;;  %746 = vmatmul.mubr.f32.vlgmr.msra.gmra.mrb[6].mxu0 %v680_v47  ;;  %v276_v47 = vsub.s32 2, %v267_v59 }
 0x29f   :  { %4436 = vmatpush1.bf16.msra.mxu0 %v5671_v48  ;;  %4467 = vmatpush3.bf16.msra.mxu1 %v5673_v51 }
 0x2a0   :  { %4438 = vmatprep.subr.bf16.mxu0 %v5675_v58  ;;  %4468 = vmatprep.subr.bf16.mxu1 %v6440_v1  ;;  %v5832_v49 = vrot.slane %v179_v15, %v276_v47  ;;  %v5838_v55 = vrot.slane %v178_v18, %v276_v47  ;;  %v6443_v47 = vld [vmem:[#allocation17_spill] sm:$0xff] }
 0x2a1   :  { %886 = vmatprep.mubr.f32.mxu0 %v6441_v2  ;;  %3794 = vmatprep.mubr.msk.f32.mxu1 %vm5468_vm0, %v6441_v2 }
 0x2a2   :  { %v576_v26 = vadd.f32 %v575_v56, %v5832_v49  ;;  %v419_v59 = vadd.f32 %v418_v50, %v5838_v55 }
 0x2a3   :  { %4440 = vmatpush1.bf16.msra.mxu0 %v5678_v5  ;;  %4470 = vmatpush3.bf16.msra.mxu1 %v5681_v9 }
 0x2a4   :  { %4442 = vmatprep.subr.bf16.mxu0 %v5684_v11  ;;  %4471 = vmatprep.subr.bf16.mxu1 %v6440_v1 }
 0x2a6   :  { %v5259_v3 = vpop.eup %5258 }
 0x2a7   :  { %v583_v43 = vadd.f32 1.0, %v5259_v3  ;;  %4444 = vmatpush1.bf16.msra.mxu0 %v5691_v24  ;;  %4473 = vmatpush3.bf16.msra.mxu1 %v5694_v28  ;;  %v5261_v53 = vpop.eup %5260 }
 0x2a8   :  { %4446 = vmatprep.subr.bf16.mxu0 %v5697_v32  ;;  %4474 = vmatprep.subr.bf16.mxu1 %v6440_v1  ;;  %v590_v21 = vadd.f32 1.0, %v5261_v53  ;;  %v6444_v53 = vld [vmem:[#allocation21_spill] sm:$0xff] }
 0x2a9   :  { %5262 = vrcp.f32 %v583_v43  ;;  %v3323_v43 = vsel %vm989_vm4, 1.0, %v6441_v2 }
 0x2aa   :  { %5264 = vrcp.f32 %v590_v21  ;;  %v6445_v21 = vld [vmem:[#allocation18_spill] sm:$0xff] }
 0x2ab   :  { %4448 = vmatpush1.bf16.msra.mxu0 %v5701_v42  ;;  %4476 = vmatpush3.bf16.msra.mxu1 %v5704_v45 }
 0x2ac   :  { %4450 = vmatprep.subr.bf16.mxu0 %v5707_v46  ;;  %4477 = vmatprep.subr.bf16.mxu1 %v6440_v1 }
 0x2af   :  { %4452 = vmatpush1.bf16.msra.mxu0 %v5711_v62  ;;  %4479 = vmatpush3.bf16.msra.mxu1 %v5714_v0 }
 0x2b0   :  { %4454 = vmatprep.subr.bf16.mxu0 %v5717_v7  ;;  %4480 = vmatprep.subr.bf16.mxu1 %v6440_v1 }
 0x2b3   :  { %v5263_v34 = vpop.eup %5262  ;;  %4456 = vmatpush1.bf16.msra.mxu0 %v5721_v27  ;;  %4482 = vmatpush3.bf16.msra.mxu1 %v5724_v36 }
 0x2b4   :  { %v593_v15 = vmul.f32 %v5263_v34, %v576_v26  ;;  %4458 = vmatprep.subr.bf16.mxu0 %v5727_v38  ;;  %4483 = vmatprep.subr.bf16.mxu1 %v6440_v1  ;;  %v5265_v50 = vpop.eup %5264  ;;  %v6446_v26 = vld [vmem:[#allocation19_spill] sm:$0xff]  ;;  %v6447_v34 = vld [vmem:[#allocation22_spill] sm:$0xff] }
 0x2b5   :  { %v596_v33 = vsub.f32 1.0, %v5265_v50  ;;  %v598_v14 = vmul.f32 %v5265_v50, %v5752_v39  ;;  %v6442_v39 = vld [vmem:[#allocation16_spill] sm:$0xff]  ;;  %v5472_v50 = vmov 4  }
 0x2b6   :  { %v594_v18 = vadd.f32 %v593_v15, %v419_v59  ;;  %v6448_v59 = vld [vmem:[#allocation20_spill] sm:$0xff]  ;;  %5253 = vset.pattern.permute.xlu1 %v5472_v50 }
 0x2b7   :  { %4460 = vmatpush1.bf16.msra.mxu0 %v5731_v54  ;;  %4485 = vmatpush3.bf16.msra.mxu1 %v5734_v60  ;;  %v6449_v15 = vld [vmem:[#allocation24_spill] sm:$0xff] }
 0x2b8   :  { %5266 = vtanh.f32 %v594_v18  ;;  %4462 = vmatprep.subr.bf16.mxu0 %v5737_v63  ;;  %4486 = vmatprep.subr.bf16.mxu1 %v6440_v1  ;;  %v6450_v18 = vld [vmem:[#allocation23_spill] sm:$0xff] }
 0x2bb   :  { %4464 = vmatpush1.bf16.msra.mxu0 %v5741_v20  ;;  %4488 = vmatpush3.bf16.msra.mxu1 %v5744_v22 }
 0x2bc   :  { %4489 = vmatprep.subr.bf16.mxu0 %v6440_v1  ;;  %4493 = vmatprep.subr.bf16.mxu1 %v5577_v10 }
 0x2c2   :  { %v5267_v40 = vpop.eup %5266 }
 0x2c3   :  { %v597_v56 = vmul.f32 %v5267_v40, %v596_v33  ;;  %v6451_v33 = vld [vmem:[#allocation15_spill] sm:$0xff] }
 0x2c4   :  { %1757 = vperm.xlu1 %5253, %v6451_v33  }
 0x2c5   :  { %v5857_v3 = vadd.f32 %v598_v14, %v597_v56 }
 0x2c7   :  { %600 = vst [vmem:[#allocation10] sm:$0x3] %v5857_v3  ;;  %887 = vmatmul.mubr.f32.vlgmr.msra.gmra.mrb[6].mxu0 %v5857_v3  ;;  %3795 = vmatmul.mubr.f32.vlgmr.msra.gmra.mrb[6].mxu1 %v5857_v3 }
 0x2c8   :  { %4491 = vmatpush3.bf16.msra.mxu0 %v5572_v6  ;;  %3801 = vmatprep.mubr.msk.f32.mxu0 %vm5468_vm0, %v6441_v2 }
 0x2c9   :  { %4524 = vmatprep.subr.bf16.mxu0 %v6440_v1  ;;  %4495 = vmatpush1.bf16.msra.mxu1 %v5580_v13 }
 0x2ca   :  { %4497 = vmatprep.subr.bf16.mxu1 %v5584_v17  ;;  %1130 = vmatprep.mubr.f32.mxu1 %v6441_v2 }
 0x2cb   :  { %3802 = vmatmul.mubr.msk.f32.vlgmr.msra.gmra.mrb[8].mxu0 %vm190_vm1, %v3323_v43 }
 0x2cc   :  { %4526 = vmatpush3.bf16.msra.mxu0 %v5630_v61  ;;  %3836 = vmatprep.mubr.msk.f32.mxu0 %vm5468_vm0, %v6441_v2 }
 0x2cd   :  { %4527 = vmatprep.subr.bf16.mxu0 %v6440_v1  ;;  %4499 = vmatpush1.bf16.msra.mxu1 %v5587_v19 }
 0x2ce   :  { %4501 = vmatprep.subr.bf16.mxu1 %v5590_v23 }
 0x2d0   :  { %4529 = vmatpush3.bf16.msra.mxu0 %v5636_v4 }
 0x2d1   :  { %4530 = vmatprep.subr.bf16.mxu0 %v6440_v1  ;;  %4503 = vmatpush1.bf16.msra.mxu1 %v5593_v25 }
 0x2d2   :  { %4505 = vmatprep.subr.bf16.mxu1 %v5596_v29 }
 0x2d4   :  { %4532 = vmatpush3.bf16.msra.mxu0 %v5642_v8 }
 0x2d5   :  { %4533 = vmatprep.subr.bf16.mxu0 %v6440_v1  ;;  %4507 = vmatpush1.bf16.msra.mxu1 %v5599_v31 }
 0x2d6   :  { %4509 = vmatprep.subr.bf16.mxu1 %v5602_v35 }
 0x2d8   :  { %4535 = vmatpush3.bf16.msra.mxu0 %v5646_v12 }
 0x2d9   :  { %4536 = vmatprep.subr.bf16.mxu0 %v6440_v1  ;;  %4511 = vmatpush1.bf16.msra.mxu1 %v5605_v37 }
 0x2da   :  { %4513 = vmatprep.subr.bf16.mxu1 %v5608_v41 }
 0x2dc   :  { %4538 = vmatpush3.bf16.msra.mxu0 %v5650_v16 }
 0x2dd   :  { %4539 = vmatprep.subr.bf16.mxu0 %v6440_v1  ;;  %4515 = vmatpush1.bf16.msra.mxu1 %v6442_v39 }
 0x2de   :  { %4517 = vmatprep.subr.bf16.mxu1 %v6443_v47 }
 0x2e0   :  { %4541 = vmatpush3.bf16.msra.mxu0 %v6444_v53 }
 0x2e1   :  { %4542 = vmatprep.subr.bf16.mxu0 %v6440_v1  ;;  %4519 = vmatpush1.bf16.msra.mxu1 %v6445_v21 }
 0x2e2   :  { %4521 = vmatprep.subr.bf16.mxu1 %v6446_v26 }
 0x2e4   :  { %4544 = vmatpush3.bf16.msra.mxu0 %v6447_v34 }
 0x2e5   :  { %4545 = vmatprep.subr.bf16.mxu0 %v6440_v1  ;;  %4523 = vmatpush1.bf16.msra.mxu1 %v6448_v59 }
 0x2e6   :  { %4549 = vmatprep.subr.bf16.mxu1 %v6449_v15 }
 0x2e8   :  { %4547 = vmatpush3.bf16.msra.mxu0 %v6450_v18 }
 0x2e9   :  { %4580 = vmatprep.subr.bf16.mxu0 %v6440_v1 }
 0x371   :  { %v818_v40 = vpop.f32.mrb[4].mxu1 }
 0x372   :  { %v3761_v44 = vpop.f32.mrb[5].mxu1 }
 0x39a   :  { %v888_v56 = vpop.f32.mrb[6].mxu0  ;;  %v959_v14 = vpop.f32.mrb[6].mxu1 }
 0x39b   :  { %v5184_v43 = vadd.f32 %v5809_v30, %v888_v56  ;;  %v890_v34 = vpop.f32.mrb[7].mxu0  ;;  %v3796_v26 = vpop.f32.mrb[7].mxu1 }
 0x39c   :  { %v5186_v59 = vadd.f32 %v5811_v52, %v890_v34 }
 0x39d   :  { %v3321_v21 = vmul.f32 -1.442695, %v5184_v43  ;;  %v1373_v43 = vpop.permute.xlu1 %1372 }
 0x39e   :  { %v1061_v15 = vpop.f32.mrb[8].mxu0  ;;  %v3322_v50 = vmul.f32 -1.442695, %v5186_v59  ;;  %v960_v59 = vadd.f32 %v959_v14, %v5832_v49  ;;  %vm1374_vm5 = vcmp.eq.s32.totalorder %v1373_v43, %v5628_v57 }
 0x39f   :  { %5268 = vpow2.f32 %v3321_v21  ;;  %v1065_v18 = vmax.f32 %v1061_v15, 0.0  ;;  %v3803_v53 = vpop.f32.mrb[9].mxu0 }
 0x3a0   :  { %5270 = vpow2.f32 %v3322_v50 }
 0x3a1   :  { %3837 = vmatmul.mubr.f32.vlgmr.msra.gmra.mrb[10].mxu0 %v1065_v18  ;;  %1131 = vmatmul.mubr.f32.vlgmr.msra.gmra.mrb[8].mxu1 %v1065_v18  ;;  %v819_v18 = vadd.f32 %v818_v40, %v5838_v55 }
 0x3a2   :  { %4551 = vmatpush1.bf16.msra.mxu1 %v5671_v48  ;;  %4582 = vmatpush3.bf16.msra.mxu0 %v5673_v51 }
 0x3a3   :  { %4553 = vmatprep.subr.bf16.mxu1 %v5675_v58  ;;  %4583 = vmatprep.subr.bf16.mxu0 %v6440_v1 }
 0x3a4   :  { %1271 = vmatprep.mubr.f32.mxu1 %v6441_v2  ;;  %3871 = vmatprep.mubr.msk.f32.mxu0 %vm5468_vm0, %v6441_v2 }
 0x3a6   :  { %4555 = vmatpush1.bf16.msra.mxu1 %v5678_v5  ;;  %4585 = vmatpush3.bf16.msra.mxu0 %v5681_v9 }
 0x3a7   :  { %4557 = vmatprep.subr.bf16.mxu1 %v5684_v11  ;;  %4586 = vmatprep.subr.bf16.mxu0 %v6440_v1 }
 0x3a9   :  { %v5269_v53 = vpop.eup %5268 }
 0x3aa   :  { %v967_v21 = vadd.f32 1.0, %v5269_v53  ;;  %4559 = vmatpush1.bf16.msra.mxu1 %v5691_v24  ;;  %4588 = vmatpush3.bf16.msra.mxu0 %v5694_v28  ;;  %v5271_v26 = vpop.eup %5270 }
 0x3ab   :  { %4561 = vmatprep.subr.bf16.mxu1 %v5697_v32  ;;  %4589 = vmatprep.subr.bf16.mxu0 %v6440_v1  ;;  %v974_v34 = vadd.f32 1.0, %v5271_v26  ;;  %v3327_v26 = vsel %vm1374_vm5, 1.0, %v6441_v2 }
 0x3ac   :  { %5272 = vrcp.f32 %v967_v21 }
 0x3ad   :  { %5274 = vrcp.f32 %v974_v34  ;;  %v6453_v34 = vld [vmem:[#allocation18_spill] sm:$0xff] }
 0x3ae   :  { %4563 = vmatpush1.bf16.msra.mxu1 %v5701_v42  ;;  %4591 = vmatpush3.bf16.msra.mxu0 %v5704_v45 }
 0x3af   :  { %4565 = vmatprep.subr.bf16.mxu1 %v5707_v46  ;;  %4592 = vmatprep.subr.bf16.mxu0 %v6440_v1 }
 0x3b2   :  { %4567 = vmatpush1.bf16.msra.mxu1 %v5711_v62  ;;  %4594 = vmatpush3.bf16.msra.mxu0 %v5714_v0 }
 0x3b3   :  { %4569 = vmatprep.subr.bf16.mxu1 %v5717_v7  ;;  %4595 = vmatprep.subr.bf16.mxu0 %v6440_v1 }
 0x3b6   :  { %v5273_v15 = vpop.eup %5272  ;;  %4571 = vmatpush1.bf16.msra.mxu1 %v5721_v27  ;;  %4597 = vmatpush3.bf16.msra.mxu0 %v5724_v36 }
 0x3b7   :  { %v977_v33 = vmul.f32 %v5273_v15, %v960_v59  ;;  %4573 = vmatprep.subr.bf16.mxu1 %v5727_v38  ;;  %4598 = vmatprep.subr.bf16.mxu0 %v6440_v1  ;;  %v5275_v40 = vpop.eup %5274  ;;  %v6454_v59 = vld [vmem:[#allocation19_spill] sm:$0xff]  ;;  %v6455_v15 = vld [vmem:[#allocation22_spill] sm:$0xff] }
 0x3b8   :  { %v980_v56 = vsub.f32 1.0, %v5275_v40  ;;  %v982_v53 = vmul.f32 %v5275_v40, %v5857_v3  ;;  %v6452_v3 = vld [vmem:[#allocation21_spill] sm:$0xff]  ;;  %v5473_v40 = vmov 5  }
 0x3b9   :  { %v978_v44 = vadd.f32 %v977_v33, %v819_v18  ;;  %v6456_v18 = vld [vmem:[#allocation20_spill] sm:$0xff]  ;;  %5254 = vset.pattern.permute.xlu0 %v5473_v40 }
 0x3ba   :  { %4575 = vmatpush1.bf16.msra.mxu1 %v5731_v54  ;;  %4600 = vmatpush3.bf16.msra.mxu0 %v5734_v60  ;;  %v6457_v33 = vld [vmem:[#allocation24_spill] sm:$0xff] }
 0x3bb   :  { %5276 = vtanh.f32 %v978_v44  ;;  %4577 = vmatprep.subr.bf16.mxu1 %v5737_v63  ;;  %4601 = vmatprep.subr.bf16.mxu0 %v6440_v1  ;;  %v6458_v44 = vld [vmem:[#allocation23_spill] sm:$0xff] }
 0x3be   :  { %4579 = vmatpush1.bf16.msra.mxu1 %v5741_v20  ;;  %4603 = vmatpush3.bf16.msra.mxu0 %v5744_v22 }
 0x3bf   :  { %4604 = vmatprep.subr.bf16.mxu1 %v6440_v1  ;;  %4608 = vmatprep.subr.bf16.mxu0 %v5577_v10 }
 0x3c5   :  { %v5277_v14 = vpop.eup %5276 }
 0x3c6   :  { %v981_v50 = vmul.f32 %v5277_v14, %v980_v56  ;;  %v5992_v56 = vld [vmem:[#allocation2] sm:$0x3] }
 0x3c7   :  { %2142 = vperm.xlu0 %5254, %v5992_v56  }
 0x3c8   :  { %v5945_v21 = vadd.f32 %v982_v53, %v981_v50 }
 0x3ca   :  { %985 = vst [vmem:[#allocation10 + $0x2] sm:$0x3] %v5945_v21  ;;  %1272 = vmatmul.mubr.f32.vlgmr.msra.gmra.mrb[8].mxu1 %v5945_v21  ;;  %3872 = vmatmul.mubr.f32.vlgmr.msra.gmra.mrb[12].mxu0 %v5945_v21 }
 0x3cb   :  { %4606 = vmatpush3.bf16.msra.mxu1 %v5572_v6  ;;  %3878 = vmatprep.mubr.msk.f32.mxu1 %vm5468_vm0, %v6441_v2 }
 0x3cc   :  { %4639 = vmatprep.subr.bf16.mxu1 %v6440_v1  ;;  %4610 = vmatpush1.bf16.msra.mxu0 %v5580_v13 }
 0x3cd   :  { %4612 = vmatprep.subr.bf16.mxu0 %v5584_v17  ;;  %1515 = vmatprep.mubr.f32.mxu0 %v6441_v2 }
 0x3ce   :  { %3879 = vmatmul.mubr.msk.f32.vlgmr.msra.gmra.mrb[10].mxu1 %vm190_vm1, %v3327_v26 }
 0x3cf   :  { %4641 = vmatpush3.bf16.msra.mxu1 %v5630_v61  ;;  %3913 = vmatprep.mubr.msk.f32.mxu1 %vm5468_vm0, %v6441_v2 }
 0x3d0   :  { %4642 = vmatprep.subr.bf16.mxu1 %v6440_v1  ;;  %4614 = vmatpush1.bf16.msra.mxu0 %v5587_v19 }
 0x3d1   :  { %4616 = vmatprep.subr.bf16.mxu0 %v5590_v23 }
 0x3d3   :  { %4644 = vmatpush3.bf16.msra.mxu1 %v5636_v4 }
 0x3d4   :  { %4645 = vmatprep.subr.bf16.mxu1 %v6440_v1  ;;  %4618 = vmatpush1.bf16.msra.mxu0 %v5593_v25 }
 0x3d5   :  { %4620 = vmatprep.subr.bf16.mxu0 %v5596_v29 }
 0x3d7   :  { %4647 = vmatpush3.bf16.msra.mxu1 %v5642_v8 }
 0x3d8   :  { %4648 = vmatprep.subr.bf16.mxu1 %v6440_v1  ;;  %4622 = vmatpush1.bf16.msra.mxu0 %v5599_v31 }
 0x3d9   :  { %4624 = vmatprep.subr.bf16.mxu0 %v5602_v35 }
 0x3db   :  { %4650 = vmatpush3.bf16.msra.mxu1 %v5646_v12 }
 0x3dc   :  { %4651 = vmatprep.subr.bf16.mxu1 %v6440_v1  ;;  %4626 = vmatpush1.bf16.msra.mxu0 %v5605_v37 }
 0x3dd   :  { %4628 = vmatprep.subr.bf16.mxu0 %v5608_v41 }
 0x3df   :  { %4653 = vmatpush3.bf16.msra.mxu1 %v5650_v16 }
 0x3e0   :  { %4654 = vmatprep.subr.bf16.mxu1 %v6440_v1  ;;  %4630 = vmatpush1.bf16.msra.mxu0 %v6442_v39 }
 0x3e1   :  { %4632 = vmatprep.subr.bf16.mxu0 %v6443_v47 }
 0x3e3   :  { %4656 = vmatpush3.bf16.msra.mxu1 %v6452_v3 }
 0x3e4   :  { %4657 = vmatprep.subr.bf16.mxu1 %v6440_v1  ;;  %4634 = vmatpush1.bf16.msra.mxu0 %v6453_v34 }
 0x3e5   :  { %4636 = vmatprep.subr.bf16.mxu0 %v6454_v59 }
 0x3e7   :  { %4659 = vmatpush3.bf16.msra.mxu1 %v6455_v15 }
 0x3e8   :  { %4660 = vmatprep.subr.bf16.mxu1 %v6440_v1  ;;  %4638 = vmatpush1.bf16.msra.mxu0 %v6456_v18 }
 0x3e9   :  { %4664 = vmatprep.subr.bf16.mxu0 %v6457_v33 }
 0x3eb   :  { %4662 = vmatpush3.bf16.msra.mxu1 %v6458_v44 }
 0x3ec   :  { %4695 = vmatprep.subr.bf16.mxu1 %v6440_v1 }
 0x474   :  { %v1203_v14 = vpop.f32.mrb[10].mxu0 }
 0x475   :  { %v3838_v43 = vpop.f32.mrb[11].mxu0 }
 0x49d   :  { %v1273_v50 = vpop.f32.mrb[8].mxu1  ;;  %v1344_v53 = vpop.f32.mrb[12].mxu0 }
 0x49e   :  { %v5188_v26 = vadd.f32 %v5809_v30, %v1273_v50  ;;  %v1275_v15 = vpop.f32.mrb[9].mxu1  ;;  %v3873_v18 = vpop.f32.mrb[13].mxu0 }
 0x49f   :  { %v5190_v33 = vadd.f32 %v5811_v52, %v1275_v15  ;;  %v1345_v18 = vadd.f32 %v1344_v53, %v5832_v49 }
 0x4a0   :  { %v3325_v59 = vmul.f32 -1.442695, %v5188_v26 }
 0x4a1   :  { %v1446_v44 = vpop.f32.mrb[10].mxu1  ;;  %v3326_v40 = vmul.f32 -1.442695, %v5190_v33 }
 0x4a2   :  { %5278 = vpow2.f32 %v3325_v59  ;;  %v1450_v34 = vmax.f32 %v1446_v44, 0.0  ;;  %v3880_v3 = vpop.f32.mrb[11].mxu1  ;;  %v1204_v44 = vadd.f32 %v1203_v14, %v5838_v55 }
 0x4a3   :  { %5280 = vpow2.f32 %v3326_v40  ;;  %v1758_v40 = vpop.permute.xlu1 %1757 }
 0x4a4   :  { %3914 = vmatmul.mubr.f32.vlgmr.msra.gmra.mrb[12].mxu1 %v1450_v34  ;;  %1516 = vmatmul.mubr.f32.vlgmr.msra.gmra.mrb[14].mxu0 %v1450_v34  ;;  %vm1759_vm6 = vcmp.eq.s32.totalorder %v1758_v40, %v5628_v57 }
 0x4a5   :  { %4666 = vmatpush1.bf16.msra.mxu0 %v5671_v48  ;;  %4697 = vmatpush3.bf16.msra.mxu1 %v5673_v51 }
 0x4a6   :  { %4668 = vmatprep.subr.bf16.mxu0 %v5675_v58  ;;  %4698 = vmatprep.subr.bf16.mxu1 %v6440_v1 }
 0x4a7   :  { %1656 = vmatprep.mubr.f32.mxu0 %v6441_v2  ;;  %3948 = vmatprep.mubr.msk.f32.mxu1 %vm5468_vm0, %v6441_v2 }
 0x4a9   :  { %4670 = vmatpush1.bf16.msra.mxu0 %v5678_v5  ;;  %4700 = vmatpush3.bf16.msra.mxu1 %v5681_v9 }
 0x4aa   :  { %4672 = vmatprep.subr.bf16.mxu0 %v5684_v11  ;;  %4701 = vmatprep.subr.bf16.mxu1 %v6440_v1 }
 0x4ac   :  { %v5279_v3 = vpop.eup %5278 }
 0x4ad   :  { %v1352_v34 = vadd.f32 1.0, %v5279_v3  ;;  %4674 = vmatpush1.bf16.msra.mxu0 %v5691_v24  ;;  %4703 = vmatpush3.bf16.msra.mxu1 %v5694_v28  ;;  %v5281_v59 = vpop.eup %5280 }
 0x4ae   :  { %4676 = vmatprep.subr.bf16.mxu0 %v5697_v32  ;;  %4704 = vmatprep.subr.bf16.mxu1 %v6440_v1  ;;  %v1359_v15 = vadd.f32 1.0, %v5281_v59 }
 0x4af   :  { %5282 = vrcp.f32 %v1352_v34 }
 0x4b0   :  { %5284 = vrcp.f32 %v1359_v15  ;;  %v3331_v15 = vsel %vm1759_vm6, 1.0, %v6441_v2 }
 0x4b1   :  { %4678 = vmatpush1.bf16.msra.mxu0 %v5701_v42  ;;  %4706 = vmatpush3.bf16.msra.mxu1 %v5704_v45 }
 0x4b2   :  { %4680 = vmatprep.subr.bf16.mxu0 %v5707_v46  ;;  %4707 = vmatprep.subr.bf16.mxu1 %v6440_v1 }
 0x4b5   :  { %4682 = vmatpush1.bf16.msra.mxu0 %v5711_v62  ;;  %4709 = vmatpush3.bf16.msra.mxu1 %v5714_v0 }
 0x4b6   :  { %4684 = vmatprep.subr.bf16.mxu0 %v5717_v7  ;;  %4710 = vmatprep.subr.bf16.mxu1 %v6440_v1 }
 0x4b9   :  { %v5283_v33 = vpop.eup %5282  ;;  %4686 = vmatpush1.bf16.msra.mxu0 %v5721_v27  ;;  %4712 = vmatpush3.bf16.msra.mxu1 %v5724_v36 }
 0x4ba   :  { %v1362_v43 = vmul.f32 %v5283_v33, %v1345_v18  ;;  %4688 = vmatprep.subr.bf16.mxu0 %v5727_v38  ;;  %4713 = vmatprep.subr.bf16.mxu1 %v6440_v1  ;;  %v5285_v14 = vpop.eup %5284  ;;  %v6460_v18 = vld [vmem:[#allocation18_spill] sm:$0xff]  ;;  %v6461_v33 = vld [vmem:[#allocation19_spill] sm:$0xff] }
 0x4bb   :  { %v1365_v53 = vsub.f32 1.0, %v5285_v14  ;;  %v1367_v34 = vmul.f32 %v5285_v14, %v5945_v21  ;;  %v6459_v21 = vld [vmem:[#allocation21_spill] sm:$0xff]  ;;  %v6465_v14 = vld [vmem:[#allocation23_spill] sm:$0xff] }
 0x4bc   :  { %v1363_v50 = vadd.f32 %v1362_v43, %v1204_v44  ;;  %v6462_v44 = vld [vmem:[#allocation22_spill] sm:$0xff]  ;;  %v6463_v43 = vld [vmem:[#allocation20_spill] sm:$0xff] }
 0x4bd   :  { %4690 = vmatpush1.bf16.msra.mxu0 %v5731_v54  ;;  %4715 = vmatpush3.bf16.msra.mxu1 %v5734_v60 }
 0x4be   :  { %5286 = vtanh.f32 %v1363_v50  ;;  %4692 = vmatprep.subr.bf16.mxu0 %v5737_v63  ;;  %4716 = vmatprep.subr.bf16.mxu1 %v6440_v1  ;;  %v6464_v50 = vld [vmem:[#allocation24_spill] sm:$0xff] }
 0x4c1   :  { %4694 = vmatpush1.bf16.msra.mxu0 %v5741_v20  ;;  %4718 = vmatpush3.bf16.msra.mxu1 %v5744_v22 }
 0x4c2   :  { %4719 = vmatprep.subr.bf16.mxu0 %v6440_v1  ;;  %4723 = vmatprep.subr.bf16.mxu1 %v5577_v10 }
 0x4c8   :  { %v5287_v26 = vpop.eup %5286 }
 0x4c9   :  { %v1366_v3 = vmul.f32 %v5287_v26, %v1365_v53  ;;  %v5474_v53 = vmov 6  }
 0x4ca   :  { %5255 = vset.pattern.permute.xlu1 %v5474_v53 }
 0x4cb   :  { %v6035_v59 = vadd.f32 %v1367_v34, %v1366_v3  ;;  %2527 = vperm.xlu1 %5255, %v5992_v56  }
 0x4cd   :  { %1370 = vst [vmem:[#allocation10 + $0x4] sm:$0x3] %v6035_v59  ;;  %1657 = vmatmul.mubr.f32.vlgmr.msra.gmra.mrb[14].mxu0 %v6035_v59  ;;  %3949 = vmatmul.mubr.f32.vlgmr.msra.gmra.mrb[14].mxu1 %v6035_v59 }
 0x4ce   :  { %4721 = vmatpush3.bf16.msra.mxu0 %v5572_v6  ;;  %3955 = vmatprep.mubr.msk.f32.mxu0 %vm5468_vm0, %v6441_v2 }
 0x4cf   :  { %4754 = vmatprep.subr.bf16.mxu0 %v6440_v1  ;;  %4725 = vmatpush1.bf16.msra.mxu1 %v5580_v13 }
 0x4d0   :  { %4727 = vmatprep.subr.bf16.mxu1 %v5584_v17  ;;  %1900 = vmatprep.mubr.f32.mxu1 %v6441_v2 }
 0x4d1   :  { %3956 = vmatmul.mubr.msk.f32.vlgmr.msra.gmra.mrb[16].mxu0 %vm190_vm1, %v3331_v15 }
 0x4d2   :  { %4756 = vmatpush3.bf16.msra.mxu0 %v5630_v61  ;;  %3990 = vmatprep.mubr.msk.f32.mxu0 %vm5468_vm0, %v6441_v2 }
 0x4d3   :  { %4757 = vmatprep.subr.bf16.mxu0 %v6440_v1  ;;  %4729 = vmatpush1.bf16.msra.mxu1 %v5587_v19 }
 0x4d4   :  { %4731 = vmatprep.subr.bf16.mxu1 %v5590_v23 }
 0x4d6   :  { %4759 = vmatpush3.bf16.msra.mxu0 %v5636_v4 }
 0x4d7   :  { %4760 = vmatprep.subr.bf16.mxu0 %v6440_v1  ;;  %4733 = vmatpush1.bf16.msra.mxu1 %v5593_v25 }
 0x4d8   :  { %4735 = vmatprep.subr.bf16.mxu1 %v5596_v29 }
 0x4da   :  { %4762 = vmatpush3.bf16.msra.mxu0 %v5642_v8 }
 0x4db   :  { %4763 = vmatprep.subr.bf16.mxu0 %v6440_v1  ;;  %4737 = vmatpush1.bf16.msra.mxu1 %v5599_v31 }
 0x4dc   :  { %4739 = vmatprep.subr.bf16.mxu1 %v5602_v35 }
 0x4de   :  { %4765 = vmatpush3.bf16.msra.mxu0 %v5646_v12 }
 0x4df   :  { %4766 = vmatprep.subr.bf16.mxu0 %v6440_v1  ;;  %4741 = vmatpush1.bf16.msra.mxu1 %v5605_v37 }
 0x4e0   :  { %4743 = vmatprep.subr.bf16.mxu1 %v5608_v41 }
 0x4e2   :  { %4768 = vmatpush3.bf16.msra.mxu0 %v5650_v16 }
 0x4e3   :  { %4769 = vmatprep.subr.bf16.mxu0 %v6440_v1  ;;  %4745 = vmatpush1.bf16.msra.mxu1 %v6442_v39 }
 0x4e4   :  { %4747 = vmatprep.subr.bf16.mxu1 %v6443_v47 }
 0x4e6   :  { %4771 = vmatpush3.bf16.msra.mxu0 %v6459_v21 }
 0x4e7   :  { %4772 = vmatprep.subr.bf16.mxu0 %v6440_v1  ;;  %4749 = vmatpush1.bf16.msra.mxu1 %v6460_v18 }
 0x4e8   :  { %4751 = vmatprep.subr.bf16.mxu1 %v6461_v33 }
 0x4ea   :  { %4774 = vmatpush3.bf16.msra.mxu0 %v6462_v44 }
 0x4eb   :  { %4775 = vmatprep.subr.bf16.mxu0 %v6440_v1  ;;  %4753 = vmatpush1.bf16.msra.mxu1 %v6463_v43 }
 0x4ec   :  { %4779 = vmatprep.subr.bf16.mxu1 %v6464_v50 }
 0x4ee   :  { %4777 = vmatpush3.bf16.msra.mxu0 %v6465_v14 }
 0x4ef   :  { %4810 = vmatprep.subr.bf16.mxu0 %v6440_v1 }
 0x577   :  { %v1588_v26 = vpop.f32.mrb[12].mxu1 }
 0x578   :  { %v3915_v40 = vpop.f32.mrb[13].mxu1 }
 0x5a0   :  { %v1658_v3 = vpop.f32.mrb[14].mxu0  ;;  %v1729_v34 = vpop.f32.mrb[14].mxu1 }
 0x5a1   :  { %v5192_v15 = vadd.f32 %v5809_v30, %v1658_v3  ;;  %v1660_v44 = vpop.f32.mrb[15].mxu0  ;;  %v3950_v33 = vpop.f32.mrb[15].mxu1 }
 0x5a2   :  { %v5194_v43 = vadd.f32 %v5811_v52, %v1660_v44 }
 0x5a3   :  { %v3329_v18 = vmul.f32 -1.442695, %v5192_v15 }
 0x5a4   :  { %v1831_v50 = vpop.f32.mrb[16].mxu0  ;;  %v3330_v53 = vmul.f32 -1.442695, %v5194_v43  ;;  %v1730_v43 = vadd.f32 %v1729_v34, %v5832_v49 }
 0x5a5   :  { %5288 = vpow2.f32 %v3329_v18  ;;  %v1835_v14 = vmax.f32 %v1831_v50, 0.0  ;;  %v3957_v21 = vpop.f32.mrb[17].mxu0 }
 0x5a6   :  { %5290 = vpow2.f32 %v3330_v53  ;;  %v2143_v53 = vpop.permute.xlu0 %2142 }
 0x5a7   :  { %3991 = vmatmul.mubr.f32.vlgmr.msra.gmra.mrb[18].mxu0 %v1835_v14  ;;  %1901 = vmatmul.mubr.f32.vlgmr.msra.gmra.mrb[16].mxu1 %v1835_v14  ;;  %v1589_v14 = vadd.f32 %v1588_v26, %v5838_v55  ;;  %vm2144_vm7 = vcmp.eq.s32.totalorder %v2143_v53, %v5628_v57 }
 0x5a8   :  { %4781 = vmatpush1.bf16.msra.mxu1 %v5671_v48  ;;  %4812 = vmatpush3.bf16.msra.mxu0 %v5673_v51 }
 0x5a9   :  { %4783 = vmatprep.subr.bf16.mxu1 %v5675_v58  ;;  %4813 = vmatprep.subr.bf16.mxu0 %v6440_v1 }
 0x5aa   :  { %2041 = vmatprep.mubr.f32.mxu1 %v6441_v2  ;;  %4025 = vmatprep.mubr.msk.f32.mxu0 %vm5468_vm0, %v6441_v2 }
 0x5ac   :  { %4785 = vmatpush1.bf16.msra.mxu1 %v5678_v5  ;;  %4815 = vmatpush3.bf16.msra.mxu0 %v5681_v9 }
 0x5ad   :  { %4787 = vmatprep.subr.bf16.mxu1 %v5684_v11  ;;  %4816 = vmatprep.subr.bf16.mxu0 %v6440_v1 }
 0x5af   :  { %v5289_v21 = vpop.eup %5288 }
 0x5b0   :  { %v1737_v18 = vadd.f32 1.0, %v5289_v21  ;;  %4789 = vmatpush1.bf16.msra.mxu1 %v5691_v24  ;;  %4818 = vmatpush3.bf16.msra.mxu0 %v5694_v28  ;;  %v5291_v33 = vpop.eup %5290 }
 0x5b1   :  { %4791 = vmatprep.subr.bf16.mxu1 %v5697_v32  ;;  %4819 = vmatprep.subr.bf16.mxu0 %v6440_v1  ;;  %v1744_v44 = vadd.f32 1.0, %v5291_v33 }
 0x5b2   :  { %5292 = vrcp.f32 %v1737_v18 }
 0x5b3   :  { %5294 = vrcp.f32 %v1744_v44  ;;  %v3335_v44 = vsel %vm2144_vm7, 1.0, %v6441_v2 }
 0x5b4   :  { %4793 = vmatpush1.bf16.msra.mxu1 %v5701_v42  ;;  %4821 = vmatpush3.bf16.msra.mxu0 %v5704_v45 }
 0x5b5   :  { %4795 = vmatprep.subr.bf16.mxu1 %v5707_v46  ;;  %4822 = vmatprep.subr.bf16.mxu0 %v6440_v1 }
 0x5b8   :  { %4797 = vmatpush1.bf16.msra.mxu1 %v5711_v62  ;;  %4824 = vmatpush3.bf16.msra.mxu0 %v5714_v0 }
 0x5b9   :  { %4799 = vmatprep.subr.bf16.mxu1 %v5717_v7  ;;  %4825 = vmatprep.subr.bf16.mxu0 %v6440_v1 }
 0x5bc   :  { %v5293_v50 = vpop.eup %5292  ;;  %4801 = vmatpush1.bf16.msra.mxu1 %v5721_v27  ;;  %4827 = vmatpush3.bf16.msra.mxu0 %v5724_v36 }
 0x5bd   :  { %v1747_v40 = vmul.f32 %v5293_v50, %v1730_v43  ;;  %4803 = vmatprep.subr.bf16.mxu1 %v5727_v38  ;;  %4828 = vmatprep.subr.bf16.mxu0 %v6440_v1  ;;  %v5295_v26 = vpop.eup %5294  ;;  %v6467_v43 = vld [vmem:[#allocation18_spill] sm:$0xff]  ;;  %v6468_v50 = vld [vmem:[#allocation19_spill] sm:$0xff] }
 0x5be   :  { %v1750_v34 = vsub.f32 1.0, %v5295_v26  ;;  %v1752_v18 = vmul.f32 %v5295_v26, %v6035_v59  ;;  %v6466_v59 = vld [vmem:[#allocation21_spill] sm:$0xff]  ;;  %v6472_v26 = vld [vmem:[#allocation23_spill] sm:$0xff] }
 0x5bf   :  { %v1748_v3 = vadd.f32 %v1747_v40, %v1589_v14  ;;  %v6469_v14 = vld [vmem:[#allocation22_spill] sm:$0xff]  ;;  %v6470_v40 = vld [vmem:[#allocation20_spill] sm:$0xff] }
 0x5c0   :  { %4805 = vmatpush1.bf16.msra.mxu1 %v5731_v54  ;;  %4830 = vmatpush3.bf16.msra.mxu0 %v5734_v60 }
 0x5c1   :  { %5296 = vtanh.f32 %v1748_v3  ;;  %4807 = vmatprep.subr.bf16.mxu1 %v5737_v63  ;;  %4831 = vmatprep.subr.bf16.mxu0 %v6440_v1  ;;  %v6471_v3 = vld [vmem:[#allocation24_spill] sm:$0xff] }
 0x5c4   :  { %4809 = vmatpush1.bf16.msra.mxu1 %v5741_v20  ;;  %4833 = vmatpush3.bf16.msra.mxu0 %v5744_v22 }
 0x5c5   :  { %4834 = vmatprep.subr.bf16.mxu1 %v6440_v1  ;;  %4838 = vmatprep.subr.bf16.mxu0 %v5577_v10 }
 0x5cb   :  { %v5297_v15 = vpop.eup %5296 }
 0x5cc   :  { %v1751_v21 = vmul.f32 %v5297_v15, %v1750_v34  ;;  %v5475_v34 = vmov 7  }
 0x5cd   :  { %5256 = vset.pattern.permute.xlu1 %v5475_v34  ;;  %5257 = vset.pattern.permute.xlu0 %v5475_v34 }
 0x5ce   :  { %v6123_v33 = vadd.f32 %v1752_v18, %v1751_v21  ;;  %2912 = vperm.xlu1 %5256, %v5992_v56  }
 0x5d0   :  { %1755 = vst [vmem:[#allocation10 + $0x6] sm:$0x3] %v6123_v33  ;;  %2042 = vmatmul.mubr.f32.vlgmr.msra.gmra.mrb[16].mxu1 %v6123_v33  ;;  %4026 = vmatmul.mubr.f32.vlgmr.msra.gmra.mrb[20].mxu0 %v6123_v33 }
 0x5d1   :  { %4836 = vmatpush3.bf16.msra.mxu1 %v5572_v6  ;;  %4032 = vmatprep.mubr.msk.f32.mxu1 %vm5468_vm0, %v6441_v2 }
 0x5d2   :  { %4869 = vmatprep.subr.bf16.mxu1 %v6440_v1  ;;  %4840 = vmatpush1.bf16.msra.mxu0 %v5580_v13 }
 0x5d3   :  { %4842 = vmatprep.subr.bf16.mxu0 %v5584_v17  ;;  %2285 = vmatprep.mubr.f32.mxu0 %v6441_v2 }
 0x5d4   :  { %4033 = vmatmul.mubr.msk.f32.vlgmr.msra.gmra.mrb[18].mxu1 %vm190_vm1, %v3335_v44 }
 0x5d5   :  { %4871 = vmatpush3.bf16.msra.mxu1 %v5630_v61  ;;  %4067 = vmatprep.mubr.msk.f32.mxu1 %vm5468_vm0, %v6441_v2 }
 0x5d6   :  { %4872 = vmatprep.subr.bf16.mxu1 %v6440_v1  ;;  %4844 = vmatpush1.bf16.msra.mxu0 %v5587_v19 }
 0x5d7   :  { %4846 = vmatprep.subr.bf16.mxu0 %v5590_v23 }
 0x5d9   :  { %4874 = vmatpush3.bf16.msra.mxu1 %v5636_v4 }
 0x5da   :  { %4875 = vmatprep.subr.bf16.mxu1 %v6440_v1  ;;  %4848 = vmatpush1.bf16.msra.mxu0 %v5593_v25 }
 0x5db   :  { %4850 = vmatprep.subr.bf16.mxu0 %v5596_v29 }
 0x5dd   :  { %4877 = vmatpush3.bf16.msra.mxu1 %v5642_v8 }
 0x5de   :  { %4878 = vmatprep.subr.bf16.mxu1 %v6440_v1  ;;  %4852 = vmatpush1.bf16.msra.mxu0 %v5599_v31 }
 0x5df   :  { %4854 = vmatprep.subr.bf16.mxu0 %v5602_v35 }
 0x5e1   :  { %4880 = vmatpush3.bf16.msra.mxu1 %v5646_v12 }
 0x5e2   :  { %4881 = vmatprep.subr.bf16.mxu1 %v6440_v1  ;;  %4856 = vmatpush1.bf16.msra.mxu0 %v5605_v37 }
 0x5e3   :  { %4858 = vmatprep.subr.bf16.mxu0 %v5608_v41 }
 0x5e5   :  { %4883 = vmatpush3.bf16.msra.mxu1 %v5650_v16 }
 0x5e6   :  { %4884 = vmatprep.subr.bf16.mxu1 %v6440_v1  ;;  %4860 = vmatpush1.bf16.msra.mxu0 %v6442_v39 }
 0x5e7   :  { %4862 = vmatprep.subr.bf16.mxu0 %v6443_v47 }
 0x5e9   :  { %4886 = vmatpush3.bf16.msra.mxu1 %v6466_v59 }
 0x5ea   :  { %4887 = vmatprep.subr.bf16.mxu1 %v6440_v1  ;;  %4864 = vmatpush1.bf16.msra.mxu0 %v6467_v43 }
 0x5eb   :  { %4866 = vmatprep.subr.bf16.mxu0 %v6468_v50 }
 0x5ed   :  { %4889 = vmatpush3.bf16.msra.mxu1 %v6469_v14 }
 0x5ee   :  { %4890 = vmatprep.subr.bf16.mxu1 %v6440_v1  ;;  %4868 = vmatpush1.bf16.msra.mxu0 %v6470_v40 }
 0x5ef   :  { %4894 = vmatprep.subr.bf16.mxu0 %v6471_v3 }
 0x5f1   :  { %4892 = vmatpush3.bf16.msra.mxu1 %v6472_v26 }
 0x5f2   :  { %4925 = vmatprep.subr.bf16.mxu1 %v6440_v1 }
 0x67a   :  { %v1973_v15 = vpop.f32.mrb[18].mxu0 }
 0x67b   :  { %v3992_v53 = vpop.f32.mrb[19].mxu0 }
 0x6a3   :  { %v2043_v21 = vpop.f32.mrb[16].mxu1  ;;  %v2114_v18 = vpop.f32.mrb[20].mxu0 }
 0x6a4   :  { %v5196_v44 = vadd.f32 %v5809_v30, %v2043_v21  ;;  %v2045_v14 = vpop.f32.mrb[17].mxu1  ;;  %v4027_v50 = vpop.f32.mrb[21].mxu0 }
 0x6a5   :  { %v5198_v3 = vadd.f32 %v5811_v52, %v2045_v14  ;;  %v2115_v14 = vadd.f32 %v2114_v18, %v5832_v49 }
 0x6a6   :  { %v3333_v40 = vmul.f32 -1.442695, %v5196_v44  ;;  %v2528_v44 = vpop.permute.xlu1 %2527 }
 0x6a7   :  { %v2216_v43 = vpop.f32.mrb[18].mxu1  ;;  %v3334_v34 = vmul.f32 -1.442695, %v5198_v3  ;;  %v1974_v3 = vadd.f32 %v1973_v15, %v5838_v55  ;;  %vm2529_vm8 = vcmp.eq.s32.totalorder %v2528_v44, %v5628_v57 }
 0x6a8   :  { %5298 = vpow2.f32 %v3333_v40  ;;  %v2220_v26 = vmax.f32 %v2216_v43, 0.0  ;;  %v4034_v59 = vpop.f32.mrb[19].mxu1 }
 0x6a9   :  { %5300 = vpow2.f32 %v3334_v34 }
 0x6aa   :  { %4068 = vmatmul.mubr.f32.vlgmr.msra.gmra.mrb[20].mxu1 %v2220_v26  ;;  %2286 = vmatmul.mubr.f32.vlgmr.msra.gmra.mrb[22].mxu0 %v2220_v26 }
 0x6ab   :  { %4896 = vmatpush1.bf16.msra.mxu0 %v5671_v48  ;;  %4927 = vmatpush3.bf16.msra.mxu1 %v5673_v51 }
 0x6ac   :  { %4898 = vmatprep.subr.bf16.mxu0 %v5675_v58  ;;  %4928 = vmatprep.subr.bf16.mxu1 %v6440_v1 }
 0x6ad   :  { %2426 = vmatprep.mubr.f32.mxu0 %v6441_v2  ;;  %4102 = vmatprep.mubr.msk.f32.mxu1 %vm5468_vm0, %v6441_v2 }
 0x6af   :  { %4900 = vmatpush1.bf16.msra.mxu0 %v5678_v5  ;;  %4930 = vmatpush3.bf16.msra.mxu1 %v5681_v9 }
 0x6b0   :  { %4902 = vmatprep.subr.bf16.mxu0 %v5684_v11  ;;  %4931 = vmatprep.subr.bf16.mxu1 %v6440_v1 }
 0x6b2   :  { %v5299_v56 = vpop.eup %5298 }
 0x6b3   :  { %v2122_v59 = vadd.f32 1.0, %v5299_v56  ;;  %4904 = vmatpush1.bf16.msra.mxu0 %v5691_v24  ;;  %4933 = vmatpush3.bf16.msra.mxu1 %v5694_v28  ;;  %v5301_v43 = vpop.eup %5300 }
 0x6b4   :  { %4906 = vmatprep.subr.bf16.mxu0 %v5697_v32  ;;  %4934 = vmatprep.subr.bf16.mxu1 %v6440_v1  ;;  %v2129_v50 = vadd.f32 1.0, %v5301_v43  ;;  %v3339_v43 = vsel %vm2529_vm8, 1.0, %v6441_v2 }
 0x6b5   :  { %5302 = vrcp.f32 %v2122_v59 }
 0x6b6   :  { %5304 = vrcp.f32 %v2129_v50  ;;  %v6474_v50 = vld [vmem:[#allocation18_spill] sm:$0xff] }
 0x6b7   :  { %4908 = vmatpush1.bf16.msra.mxu0 %v5701_v42  ;;  %4936 = vmatpush3.bf16.msra.mxu1 %v5704_v45 }
 0x6b8   :  { %4910 = vmatprep.subr.bf16.mxu0 %v5707_v46  ;;  %4937 = vmatprep.subr.bf16.mxu1 %v6440_v1 }
 0x6bb   :  { %4912 = vmatpush1.bf16.msra.mxu0 %v5711_v62  ;;  %4939 = vmatpush3.bf16.msra.mxu1 %v5714_v0 }
 0x6bc   :  { %4914 = vmatprep.subr.bf16.mxu0 %v5717_v7  ;;  %4940 = vmatprep.subr.bf16.mxu1 %v6440_v1 }
 0x6bf   :  { %v5303_v40 = vpop.eup %5302  ;;  %4916 = vmatpush1.bf16.msra.mxu0 %v5721_v27  ;;  %4942 = vmatpush3.bf16.msra.mxu1 %v5724_v36 }
 0x6c0   :  { %v2132_v26 = vmul.f32 %v5303_v40, %v2115_v14  ;;  %4918 = vmatprep.subr.bf16.mxu0 %v5727_v38  ;;  %4943 = vmatprep.subr.bf16.mxu1 %v6440_v1  ;;  %v5305_v15 = vpop.eup %5304  ;;  %v6475_v14 = vld [vmem:[#allocation19_spill] sm:$0xff]  ;;  %v6476_v40 = vld [vmem:[#allocation22_spill] sm:$0xff] }
 0x6c1   :  { %v2135_v21 = vsub.f32 1.0, %v5305_v15  ;;  %v2137_v56 = vmul.f32 %v5305_v15, %v6123_v33  ;;  %v6473_v33 = vld [vmem:[#allocation21_spill] sm:$0xff] }
 0x6c2   :  { %v2133_v53 = vadd.f32 %v2132_v26, %v1974_v3  ;;  %v6477_v3 = vld [vmem:[#allocation20_spill] sm:$0xff] }
 0x6c3   :  { %4920 = vmatpush1.bf16.msra.mxu0 %v5731_v54  ;;  %4945 = vmatpush3.bf16.msra.mxu1 %v5734_v60  ;;  %v6478_v26 = vld [vmem:[#allocation24_spill] sm:$0xff] }
 0x6c4   :  { %5306 = vtanh.f32 %v2133_v53  ;;  %4922 = vmatprep.subr.bf16.mxu0 %v5737_v63  ;;  %4946 = vmatprep.subr.bf16.mxu1 %v6440_v1  ;;  %v6479_v53 = vld [vmem:[#allocation23_spill] sm:$0xff] }
 0x6c7   :  { %4924 = vmatpush1.bf16.msra.mxu0 %v5741_v20  ;;  %4948 = vmatpush3.bf16.msra.mxu1 %v5744_v22 }
 0x6c8   :  { %4949 = vmatprep.subr.bf16.mxu0 %v6440_v1  ;;  %4953 = vmatprep.subr.bf16.mxu1 %v5577_v10 }
 0x6ce   :  { %v5307_v18 = vpop.eup %5306 }
 0x6cf   :  { %v2136_v34 = vmul.f32 %v5307_v18, %v2135_v21 }
 0x6d1   :  { %v6211_v59 = vadd.f32 %v2137_v56, %v2136_v34 }
 0x6d3   :  { %2140 = vst [vmem:[#allocation10 + $0x8] sm:$0x3] %v6211_v59  ;;  %2427 = vmatmul.mubr.f32.vlgmr.msra.gmra.mrb[22].mxu0 %v6211_v59  ;;  %4103 = vmatmul.mubr.f32.vlgmr.msra.gmra.mrb[22].mxu1 %v6211_v59 }
 0x6d4   :  { %4951 = vmatpush3.bf16.msra.mxu0 %v5572_v6  ;;  %4109 = vmatprep.mubr.msk.f32.mxu0 %vm5468_vm0, %v6441_v2 }
 0x6d5   :  { %4984 = vmatprep.subr.bf16.mxu0 %v6440_v1  ;;  %4955 = vmatpush1.bf16.msra.mxu1 %v5580_v13 }
 0x6d6   :  { %4957 = vmatprep.subr.bf16.mxu1 %v5584_v17  ;;  %2670 = vmatprep.mubr.f32.mxu1 %v6441_v2 }
 0x6d7   :  { %4110 = vmatmul.mubr.msk.f32.vlgmr.msra.gmra.mrb[24].mxu0 %vm190_vm1, %v3339_v43 }
 0x6d8   :  { %4986 = vmatpush3.bf16.msra.mxu0 %v5630_v61  ;;  %4144 = vmatprep.mubr.msk.f32.mxu0 %vm5468_vm0, %v6441_v2 }
 0x6d9   :  { %4987 = vmatprep.subr.bf16.mxu0 %v6440_v1  ;;  %4959 = vmatpush1.bf16.msra.mxu1 %v5587_v19 }
 0x6da   :  { %4961 = vmatprep.subr.bf16.mxu1 %v5590_v23 }
 0x6dc   :  { %4989 = vmatpush3.bf16.msra.mxu0 %v5636_v4 }
 0x6dd   :  { %4990 = vmatprep.subr.bf16.mxu0 %v6440_v1  ;;  %4963 = vmatpush1.bf16.msra.mxu1 %v5593_v25 }
 0x6de   :  { %4965 = vmatprep.subr.bf16.mxu1 %v5596_v29 }
 0x6e0   :  { %4992 = vmatpush3.bf16.msra.mxu0 %v5642_v8 }
 0x6e1   :  { %4993 = vmatprep.subr.bf16.mxu0 %v6440_v1  ;;  %4967 = vmatpush1.bf16.msra.mxu1 %v5599_v31 }
 0x6e2   :  { %4969 = vmatprep.subr.bf16.mxu1 %v5602_v35 }
 0x6e4   :  { %4995 = vmatpush3.bf16.msra.mxu0 %v5646_v12 }
 0x6e5   :  { %4996 = vmatprep.subr.bf16.mxu0 %v6440_v1  ;;  %4971 = vmatpush1.bf16.msra.mxu1 %v5605_v37 }
 0x6e6   :  { %4973 = vmatprep.subr.bf16.mxu1 %v5608_v41 }
 0x6e8   :  { %4998 = vmatpush3.bf16.msra.mxu0 %v5650_v16 }
 0x6e9   :  { %4999 = vmatprep.subr.bf16.mxu0 %v6440_v1  ;;  %4975 = vmatpush1.bf16.msra.mxu1 %v6442_v39 }
 0x6ea   :  { %4977 = vmatprep.subr.bf16.mxu1 %v6443_v47 }
 0x6ec   :  { %5001 = vmatpush3.bf16.msra.mxu0 %v6473_v33 }
 0x6ed   :  { %5002 = vmatprep.subr.bf16.mxu0 %v6440_v1  ;;  %4979 = vmatpush1.bf16.msra.mxu1 %v6474_v50 }
 0x6ee   :  { %4981 = vmatprep.subr.bf16.mxu1 %v6475_v14 }
 0x6f0   :  { %5004 = vmatpush3.bf16.msra.mxu0 %v6476_v40 }
 0x6f1   :  { %5005 = vmatprep.subr.bf16.mxu0 %v6440_v1  ;;  %4983 = vmatpush1.bf16.msra.mxu1 %v6477_v3 }
 0x6f2   :  { %5009 = vmatprep.subr.bf16.mxu1 %v6478_v26 }
 0x6f4   :  { %5007 = vmatpush3.bf16.msra.mxu0 %v6479_v53 }
 0x6f5   :  { %5040 = vmatprep.subr.bf16.mxu0 %v6440_v1 }
 0x77d   :  { %v2358_v15 = vpop.f32.mrb[20].mxu1 }
 0x77e   :  { %v4069_v21 = vpop.f32.mrb[21].mxu1 }
 0x77f   :  { %v2359_v21 = vadd.f32 %v2358_v15, %v5838_v55 }
 0x7a6   :  { %v2428_v18 = vpop.f32.mrb[22].mxu0  ;;  %v2499_v44 = vpop.f32.mrb[22].mxu1 }
 0x7a7   :  { %v5200_v34 = vadd.f32 %v5809_v30, %v2428_v18  ;;  %v2430_v56 = vpop.f32.mrb[23].mxu0  ;;  %v4104_v43 = vpop.f32.mrb[23].mxu1 }
 0x7a8   :  { %v5202_v40 = vadd.f32 %v5811_v52, %v2430_v56  ;;  %v2913_v43 = vpop.permute.xlu1 %2912 }
 0x7a9   :  { %v3337_v14 = vmul.f32 -1.442695, %v5200_v34  ;;  %vm2914_vm9 = vcmp.eq.s32.totalorder %v2913_v43, %v5628_v57 }
 0x7aa   :  { %v2601_v50 = vpop.f32.mrb[24].mxu0  ;;  %v3338_v53 = vmul.f32 -1.442695, %v5202_v40 }
 0x7ab   :  { %5308 = vpow2.f32 %v3337_v14  ;;  %v2605_v3 = vmax.f32 %v2601_v50, 0.0  ;;  %v4111_v33 = vpop.f32.mrb[25].mxu0 }
 0x7ac   :  { %5310 = vpow2.f32 %v3338_v53 }
 0x7ad   :  { %4145 = vmatmul.mubr.f32.vlgmr.msra.gmra.mrb[26].mxu0 %v2605_v3  ;;  %2671 = vmatmul.mubr.f32.vlgmr.msra.gmra.mrb[24].mxu1 %v2605_v3  ;;  %v2500_v3 = vadd.f32 %v2499_v44, %v5832_v49 }
 0x7ae   :  { %5011 = vmatpush1.bf16.msra.mxu1 %v5671_v48  ;;  %5042 = vmatpush3.bf16.msra.mxu0 %v5673_v51 }
 0x7af   :  { %5013 = vmatprep.subr.bf16.mxu1 %v5675_v58  ;;  %5043 = vmatprep.subr.bf16.mxu0 %v6440_v1 }
 0x7b0   :  { %2811 = vmatprep.mubr.f32.mxu1 %v6441_v2  ;;  %4179 = vmatprep.mubr.msk.f32.mxu0 %vm5468_vm0, %v6441_v2 }
 0x7b2   :  { %5015 = vmatpush1.bf16.msra.mxu1 %v5678_v5  ;;  %5045 = vmatpush3.bf16.msra.mxu0 %v5681_v9 }
 0x7b3   :  { %5017 = vmatprep.subr.bf16.mxu1 %v5684_v11  ;;  %5046 = vmatprep.subr.bf16.mxu0 %v6440_v1 }
 0x7b5   :  { %v5309_v33 = vpop.eup %5308 }
 0x7b6   :  { %v2507_v50 = vadd.f32 1.0, %v5309_v33  ;;  %5019 = vmatpush1.bf16.msra.mxu1 %v5691_v24  ;;  %5048 = vmatpush3.bf16.msra.mxu0 %v5694_v28  ;;  %v5311_v14 = vpop.eup %5310 }
 0x7b7   :  { %5021 = vmatprep.subr.bf16.mxu1 %v5697_v32  ;;  %5049 = vmatprep.subr.bf16.mxu0 %v6440_v1  ;;  %v2514_v40 = vadd.f32 1.0, %v5311_v14 }
 0x7b8   :  { %5312 = vrcp.f32 %v2507_v50 }
 0x7b9   :  { %5314 = vrcp.f32 %v2514_v40  ;;  %v3343_v40 = vsel %vm2914_vm9, 1.0, %v6441_v2 }
 0x7ba   :  { %5023 = vmatpush1.bf16.msra.mxu1 %v5701_v42  ;;  %5051 = vmatpush3.bf16.msra.mxu0 %v5704_v45 }
 0x7bb   :  { %5025 = vmatprep.subr.bf16.mxu1 %v5707_v46  ;;  %5052 = vmatprep.subr.bf16.mxu0 %v6440_v1 }
 0x7be   :  { %5027 = vmatpush1.bf16.msra.mxu1 %v5711_v62  ;;  %5054 = vmatpush3.bf16.msra.mxu0 %v5714_v0 }
 0x7bf   :  { %5029 = vmatprep.subr.bf16.mxu1 %v5717_v7  ;;  %5055 = vmatprep.subr.bf16.mxu0 %v6440_v1 }
 0x7c2   :  { %v5313_v53 = vpop.eup %5312  ;;  %5031 = vmatpush1.bf16.msra.mxu1 %v5721_v27  ;;  %5057 = vmatpush3.bf16.msra.mxu0 %v5724_v36 }
 0x7c3   :  { %v2517_v18 = vmul.f32 %v5313_v53, %v2500_v3  ;;  %5033 = vmatprep.subr.bf16.mxu1 %v5727_v38  ;;  %5058 = vmatprep.subr.bf16.mxu0 %v6440_v1  ;;  %v5315_v15 = vpop.eup %5314 }
 0x7c4   :  { %v2520_v44 = vsub.f32 1.0, %v5315_v15  ;;  %v2522_v50 = vmul.f32 %v5315_v15, %v6211_v59 }
 0x7c5   :  { %v2518_v34 = vadd.f32 %v2517_v18, %v2359_v21 }
 0x7c6   :  { %5035 = vmatpush1.bf16.msra.mxu1 %v5731_v54  ;;  %5060 = vmatpush3.bf16.msra.mxu0 %v5734_v60 }
 0x7c7   :  { %5316 = vtanh.f32 %v2518_v34  ;;  %5037 = vmatprep.subr.bf16.mxu1 %v5737_v63  ;;  %5061 = vmatprep.subr.bf16.mxu0 %v6440_v1 }
 0x7ca   :  { %5039 = vmatpush1.bf16.msra.mxu1 %v5741_v20  ;;  %5063 = vmatpush3.bf16.msra.mxu0 %v5744_v22 }
 0x7cb   :  { %5064 = vmatprep.subr.bf16.mxu1 %v6440_v1  ;;  %5068 = vmatprep.subr.bf16.mxu0 %v5577_v10  ;;  %v6481_v10 = vld [vmem:[#allocation18_spill] sm:$0xff] }
 0x7d1   :  { %v5317_v56 = vpop.eup %5316 }
 0x7d2   :  { %v2521_v33 = vmul.f32 %v5317_v56, %v2520_v44 }
 0x7d4   :  { %v6298_v14 = vadd.f32 %v2522_v50, %v2521_v33 }
 0x7d6   :  { %2525 = vst [vmem:[#allocation10 + $0xa] sm:$0x3] %v6298_v14  ;;  %2812 = vmatmul.mubr.f32.vlgmr.msra.gmra.mrb[24].mxu1 %v6298_v14  ;;  %4180 = vmatmul.mubr.f32.vlgmr.msra.gmra.mrb[28].mxu0 %v6298_v14 }
 0x7d7   :  { %5066 = vmatpush3.bf16.msra.mxu1 %v5572_v6  ;;  %4186 = vmatprep.mubr.msk.f32.mxu1 %vm5468_vm0, %v6441_v2  ;;  %v6480_v6 = vld [vmem:[#allocation21_spill] sm:$0xff] }
 0x7d8   :  { %5099 = vmatprep.subr.bf16.mxu1 %v6440_v1  ;;  %5070 = vmatpush1.bf16.msra.mxu0 %v5580_v13  ;;  %v6482_v13 = vld [vmem:[#allocation19_spill] sm:$0xff] }
 0x7d9   :  { %5072 = vmatprep.subr.bf16.mxu0 %v5584_v17  ;;  %3055 = vmatprep.mubr.f32.mxu0 %v6441_v2  ;;  %v6483_v17 = vld [vmem:[#allocation22_spill] sm:$0xff] }
 0x7da   :  { %4187 = vmatmul.mubr.msk.f32.vlgmr.msra.gmra.mrb[26].mxu1 %vm190_vm1, %v3343_v40 }
 0x7db   :  { %5101 = vmatpush3.bf16.msra.mxu1 %v5630_v61  ;;  %4221 = vmatprep.mubr.msk.f32.mxu1 %vm5468_vm0, %v6441_v2 }
 0x7dc   :  { %5102 = vmatprep.subr.bf16.mxu1 %v6440_v1  ;;  %5074 = vmatpush1.bf16.msra.mxu0 %v5587_v19  ;;  %v6484_v19 = vld [vmem:[#allocation20_spill] sm:$0xff] }
 0x7dd   :  { %5076 = vmatprep.subr.bf16.mxu0 %v5590_v23  ;;  %v6485_v23 = vld [vmem:[#allocation23_spill] sm:$0xff] }
 0x7df   :  { %5104 = vmatpush3.bf16.msra.mxu1 %v5636_v4 }
 0x7e0   :  { %5105 = vmatprep.subr.bf16.mxu1 %v6440_v1  ;;  %5078 = vmatpush1.bf16.msra.mxu0 %v5593_v25 }
 0x7e1   :  { %5080 = vmatprep.subr.bf16.mxu0 %v5596_v29 }
 0x7e3   :  { %5107 = vmatpush3.bf16.msra.mxu1 %v5642_v8 }
 0x7e4   :  { %5108 = vmatprep.subr.bf16.mxu1 %v6440_v1  ;;  %5082 = vmatpush1.bf16.msra.mxu0 %v5599_v31 }
 0x7e5   :  { %5084 = vmatprep.subr.bf16.mxu0 %v5602_v35 }
 0x7e7   :  { %5110 = vmatpush3.bf16.msra.mxu1 %v5646_v12 }
 0x7e8   :  { %5111 = vmatprep.subr.bf16.mxu1 %v6440_v1  ;;  %5086 = vmatpush1.bf16.msra.mxu0 %v5605_v37 }
 0x7e9   :  { %5088 = vmatprep.subr.bf16.mxu0 %v5608_v41 }
 0x7eb   :  { %5113 = vmatpush3.bf16.msra.mxu1 %v5650_v16 }
 0x7ec   :  { %5114 = vmatprep.subr.bf16.mxu1 %v6440_v1  ;;  %5090 = vmatpush1.bf16.msra.mxu0 %v6442_v39 }
 0x7ed   :  { %5092 = vmatprep.subr.bf16.mxu0 %v6443_v47 }
 0x7ef   :  { %5116 = vmatpush3.bf16.msra.mxu1 %v6480_v6 }
 0x7f0   :  { %5117 = vmatprep.subr.bf16.mxu1 %v6440_v1  ;;  %5094 = vmatpush1.bf16.msra.mxu0 %v6481_v10 }
 0x7f1   :  { %5096 = vmatprep.subr.bf16.mxu0 %v6482_v13 }
 0x7f3   :  { %5119 = vmatpush3.bf16.msra.mxu1 %v6483_v17 }
 0x7f4   :  { %5120 = vmatprep.subr.bf16.mxu1 %v6440_v1  ;;  %5098 = vmatpush1.bf16.msra.mxu0 %v6484_v19 }
 0x7f5   :  { %5124 = vmatprep.subr.bf16.mxu0 %v6478_v26 }
 0x7f7   :  { %5122 = vmatpush3.bf16.msra.mxu1 %v6485_v23 }
 0x7f8   :  { %5155 = vmatprep.subr.bf16.mxu1 %v6440_v1 }
 0x880   :  { %v2743_v25 = vpop.f32.mrb[26].mxu0 }
 0x881   :  { %v4146_v29 = vpop.f32.mrb[27].mxu0 }
 0x8a9   :  { %v2813_v31 = vpop.f32.mrb[24].mxu1  ;;  %v2884_v35 = vpop.f32.mrb[28].mxu0 }
 0x8aa   :  { %v5204_v37 = vadd.f32 %v5809_v30, %v2813_v31  ;;  %v2815_v41 = vpop.f32.mrb[25].mxu1  ;;  %v4181_v57 = vpop.f32.mrb[29].mxu0 }
 0x8ab   :  { %v5206_v4 = vadd.f32 %v5811_v52, %v2815_v41 }
 0x8ac   :  { %v3341_v61 = vmul.f32 -1.442695, %v5204_v37 }
 0x8ad   :  { %v2986_v8 = vpop.f32.mrb[26].mxu1  ;;  %v3342_v39 = vmul.f32 -1.442695, %v5206_v4 }
 0x8ae   :  { %5318 = vpow2.f32 %v3341_v61  ;;  %v2990_v12 = vmax.f32 %v2986_v8, 0.0  ;;  %v4188_v16 = vpop.f32.mrb[27].mxu1 }
 0x8af   :  { %5320 = vpow2.f32 %v3342_v39 }
 0x8b0   :  { %4222 = vmatmul.mubr.f32.vlgmr.msra.gmra.mrb[28].mxu1 %v2990_v12  ;;  %3056 = vmatmul.mubr.f32.vlgmr.msra.gmra.mrb[30].mxu0 %v2990_v12 }
 0x8b1   :  { %5126 = vmatpush1.bf16.msra.mxu0 %v5671_v48  ;;  %5157 = vmatpush3.bf16.msra.mxu1 %v5673_v51 }
 0x8b2   :  { %5128 = vmatprep.subr.bf16.mxu0 %v5675_v58  ;;  %5158 = vmatprep.subr.bf16.mxu1 %v6440_v1 }
 0x8b3   :  { %3196 = vmatprep.mubr.f32.mxu0 %v6441_v2  ;;  %4256 = vmatprep.mubr.msk.f32.mxu1 %vm5468_vm0, %v6441_v2 }
 0x8b5   :  { %5130 = vmatpush1.bf16.msra.mxu0 %v5678_v5  ;;  %5160 = vmatpush3.bf16.msra.mxu1 %v5681_v9  ;;  %v2885_v9 = vadd.f32 %v2884_v35, %v5832_v49 }
 0x8b6   :  { %5132 = vmatprep.subr.bf16.mxu0 %v5684_v11  ;;  %5161 = vmatprep.subr.bf16.mxu1 %v6440_v1 }
 0x8b8   :  { %v5319_v48 = vpop.eup %5318 }
 0x8b9   :  { %v2892_v51 = vadd.f32 1.0, %v5319_v48  ;;  %5134 = vmatpush1.bf16.msra.mxu0 %v5691_v24  ;;  %5163 = vmatpush3.bf16.msra.mxu1 %v5694_v28  ;;  %v5321_v58 = vpop.eup %5320  ;;  %v2744_v24 = vadd.f32 %v2743_v25, %v5838_v55 }
 0x8ba   :  { %5136 = vmatprep.subr.bf16.mxu0 %v5697_v32  ;;  %5164 = vmatprep.subr.bf16.mxu1 %v6440_v1  ;;  %v2899_v5 = vadd.f32 1.0, %v5321_v58 }
 0x8bb   :  { %5322 = vrcp.f32 %v2892_v51 }
 0x8bc   :  { %5324 = vrcp.f32 %v2899_v5 }
 0x8bd   :  { %5138 = vmatpush1.bf16.msra.mxu0 %v5701_v42  ;;  %5166 = vmatpush3.bf16.msra.mxu1 %v5704_v45 }
 0x8be   :  { %5140 = vmatprep.subr.bf16.mxu0 %v5707_v46  ;;  %5167 = vmatprep.subr.bf16.mxu1 %v6440_v1 }
 0x8c1   :  { %5142 = vmatpush1.bf16.msra.mxu0 %v5711_v62  ;;  %5169 = vmatpush3.bf16.msra.mxu1 %v5714_v0 }
 0x8c2   :  { %5144 = vmatprep.subr.bf16.mxu0 %v5717_v7  ;;  %5170 = vmatprep.subr.bf16.mxu1 %v6440_v1 }
 0x8c5   :  { %v5323_v11 = vpop.eup %5322  ;;  %5146 = vmatpush1.bf16.msra.mxu0 %v5721_v27  ;;  %5172 = vmatpush3.bf16.msra.mxu1 %v5724_v36 }
 0x8c6   :  { %v2902_v28 = vmul.f32 %v5323_v11, %v2885_v9  ;;  %5148 = vmatprep.subr.bf16.mxu0 %v5727_v38  ;;  %5173 = vmatprep.subr.bf16.mxu1 %v6440_v1  ;;  %v5325_v42 = vpop.eup %5324 }
 0x8c7   :  { %v2905_v45 = vsub.f32 1.0, %v5325_v42  ;;  %v2907_v0 = vmul.f32 %v5325_v42, %v6298_v14 }
 0x8c8   :  { %v2903_v32 = vadd.f32 %v2902_v28, %v2744_v24 }
 0x8c9   :  { %5150 = vmatpush1.bf16.msra.mxu0 %v5731_v54  ;;  %5175 = vmatpush3.bf16.msra.mxu1 %v5734_v60 }
 0x8ca   :  { %5326 = vtanh.f32 %v2903_v32  ;;  %5152 = vmatprep.subr.bf16.mxu0 %v5737_v63  ;;  %5176 = vmatprep.subr.bf16.mxu1 %v6440_v1 }
 0x8cd   :  { %5154 = vmatpush1.bf16.msra.mxu0 %v5741_v20  ;;  %5178 = vmatpush3.bf16.msra.mxu1 %v5744_v22 }
 0x8d4   :  { %v5327_v46 = vpop.eup %5326 }
 0x8d5   :  { %v2906_v62 = vmul.f32 %v5327_v46, %v2905_v45 }
 0x8d7   :  { %v2908_v7 = vadd.f32 %v2907_v0, %v2906_v62 }
 0x8d9   :  { %2910 = vst [vmem:[#allocation10 + $0xc] sm:$0x3] %v2908_v7  ;;  %3197 = vmatmul.mubr.f32.vlgmr.msra.gmra.mrb[30].mxu0 %v2908_v7  ;;  %4257 = vmatmul.mubr.f32.vlgmr.msra.gmra.mrb[30].mxu1 %v2908_v7 }
 0x983   :  { %v3128_v27 = vpop.f32.mrb[28].mxu1 }
 0x984   :  { %v4223_v36 = vpop.f32.mrb[29].mxu1  ;;  %v3129_v18 = vadd.f32 %v3128_v27, %v5838_v55 }
 0x9ac   :  { %v3198_v38 = vpop.f32.mrb[30].mxu0  ;;  %v3269_v54 = vpop.f32.mrb[30].mxu1 }
 0x9ad   :  { %v5208_v60 = vadd.f32 %v5809_v30, %v3198_v38  ;;  %v3200_v63 = vpop.f32.mrb[31].mxu0  ;;  %v4258_v20 = vpop.f32.mrb[31].mxu1  ;;  %v3270_v53 = vadd.f32 %v3269_v54, %v5832_v49 }
 0x9ae   :  { %v5210_v22 = vadd.f32 %v5811_v52, %v3200_v63 }
 0x9af   :  { %v3345_v1 = vmul.f32 -1.442695, %v5208_v60 }
 0x9b0   :  { %v3346_v2 = vmul.f32 -1.442695, %v5210_v22 }
 0x9b1   :  { %5328 = vpow2.f32 %v3345_v1 }
 0x9b2   :  { %5330 = vpow2.f32 %v3346_v2 }
 0x9bb   :  { %v5329_v47 = vpop.eup %5328 }
 0x9bc   :  { %v3277_v59 = vadd.f32 1.0, %v5329_v47  ;;  %v5331_v26 = vpop.eup %5330 }
 0x9bd   :  { %v3284_v3 = vadd.f32 1.0, %v5331_v26 }
 0x9be   :  { %5332 = vrcp.f32 %v3277_v59 }
 0x9bf   :  { %5334 = vrcp.f32 %v3284_v3 }
 0x9c8   :  { %v5333_v21 = vpop.eup %5332 }
 0x9c9   :  { %v3287_v34 = vmul.f32 %v5333_v21, %v3270_v53  ;;  %v5335_v15 = vpop.eup %5334 }
 0x9ca   :  { %v3290_v44 = vsub.f32 1.0, %v5335_v15  ;;  %v3292_v43 = vmul.f32 %v5335_v15, %v2908_v7 }
 0x9cb   :  { %v3288_v30 = vadd.f32 %v3287_v34, %v3129_v18 }
 0x9cd   :  { %5336 = vtanh.f32 %v3288_v30 }
 0x9d7   :  { %v5337_v52 = vpop.eup %5336 }
 0x9d8   :  { %v3291_v56 = vmul.f32 %v5337_v52, %v3290_v44 }
 0x9da   :  { %v3293_v33 = vadd.f32 %v3292_v43, %v3291_v56 }
 0x9dc   :  { %3295 = vst [vmem:[#allocation10 + $0xe] sm:$0x3] %v3293_v33 }
 0x9dd   :  { %5438 = shalt.err (!%p5435_p8)
}
 0x9de   :  { %s5439_s10 = scalar_lea.hbm %s6406_s7, 256 }
 0x9df   :  { %p5440_p9 = scmp.ne.s32.totalorder %s6406_s7, %s5439_s10  ;;  %p5443_p10 = scmp.lt.u32.totalorder %s5439_s10, %s6406_s7 }
 0x9e1   :  { %p5445_p11 = pnand %p5443_p10, %p5440_p9 }
 0x9e3   :  { %5448 = shalt.err (!%p5445_p11)
}
 0x9e4   :  { %s5477_s14 = smov 32   ;;  %s5478_s15 = smov 2  }
 0x9e5   :  { %3307 = dma.vmem_to_hbm [thread:$0]  %s3302_s5, 256, %s6406_s7, [#allocation4], %s5477_s14, %s5477_s14, %s5478_s15  }
 0x9e6   :  { %5455 = dma.done.wait [#allocation4], 256  }
 0x9e7   :  { %5456 = vsyncadd [#allocation4], 4294967040 }
 0x9e8   :  { %3311 = vsyncpa [#allocation3], 1 }
 0x9e9   :  { %3312 = vsyncpa [#allocation6], 1 }
 0x9ea   :  { %3313 = vsyncpa [#allocation9], 1 }
 0x9eb   :  { %3314 = vsyncpa [#allocation4], 1 }

</bundles_post_ra>
